<compile_context>
chip_gen: v6e
topology: v6e:2x2x1
jax: 0.10.0
libtpu: 0.0.40
codegen_flags: <defaults>
</compile_context>

<pallas_src>
import jax
import jax.numpy as jnp
from jax.experimental import pallas as pl
from jax.experimental.pallas import tpu as pltpu

MODEL_DIM = 32
NUM_HEADS = 4
FFN_DIM = 64
DIM_PER_HEAD = MODEL_DIM // NUM_HEADS
LN_EPS = 1e-5

# Reproduces the reference's quirky scale:
#   scale = (key.size(-1) // num_heads) ** -0.5  after split_heads,
# i.e. (dim_per_head // num_heads) ** -0.5
assert DIM_PER_HEAD // NUM_HEADS > 0, (
    "reference scale integer-divides to zero for NUM_HEADS > DIM_PER_HEAD")
SCALE = float((DIM_PER_HEAD // NUM_HEADS) ** (-0.5))


def _layer_norm(x, gamma, beta):
    mu = jnp.mean(x, axis=-1, keepdims=True)
    xc = x - mu
    var = jnp.mean(xc * xc, axis=-1, keepdims=True)
    return xc * jax.lax.rsqrt(var + LN_EPS) * gamma + beta


def decoder_layer_kernel(
    dec_ref, enc_ref,
    wqkv1_ref, bqkv1_ref, wo1_ref, bo1_ref, ln1_ref,
    wqkv2_ref, bqkv2_ref, wo2_ref, bo2_ref, ln2_ref,
    fw1_ref, fb1_ref, fw2_ref, fb2_ref, fln_ref,
    out_ref, self_attn_ref, ctx_attn_ref,
):
    """One grid step == one batch element (leading batch dim is squeezed)."""
    D, H, dh = MODEL_DIM, NUM_HEADS, DIM_PER_HEAD
    bf16 = jnp.bfloat16

    dec = dec_ref[...]    # (Ld, D) f32
    enc = enc_ref[...]    # (Le, D) f32

    def mha(xq, xkv, wqkv_ref, bqkv_ref, wo_ref, bo_ref, ln_ref, attn_ref,
            is_self_attn):
        wqkv = wqkv_ref[...].astype(bf16)     # (D, 3D)  [Wq | Wk | Wv]
        bqkv = bqkv_ref[...]                  # (1, 3D)  f32

        if is_self_attn:
            # One full-width (Lq, D) @ (D, 3D) push for q, k and v.
            qkv = jnp.dot(xq.astype(bf16), wqkv,
                          preferred_element_type=jnp.float32) + bqkv
            q2, k2, v2 = qkv[:, :D], qkv[:, D:2 * D], qkv[:, 2 * D:]
        else:
            # Query from xq, fused K/V projection from xkv.
            q2 = jnp.dot(xq.astype(bf16), wqkv[:, :D],
                         preferred_element_type=jnp.float32) + bqkv[:, :D]
            kv = jnp.dot(xkv.astype(bf16), wqkv[:, D:],
                         preferred_element_type=jnp.float32) + bqkv[:, D:]
            k2, v2 = kv[:, :D], kv[:, D:]

        # Per-head scaled dot-product attention.  The score / context matmuls
        # are inherently per-head (K = dh = 8); static lane slices of the
        # single-vreg q/k/v keep the relayouts trivial.
        ctx_heads = []
        for h in range(H):
            sl = slice(h * dh, (h + 1) * dh)
            qh = q2[:, sl].astype(bf16)       # (Lq, dh)
            kh = k2[:, sl].astype(bf16)       # (Lk, dh)
            vh = v2[:, sl].astype(bf16)       # (Lk, dh)

            s = jnp.einsum('qe,ke->qk', qh, kh,
                           preferred_element_type=jnp.float32) * SCALE
            s = s - jnp.max(s, axis=-1, keepdims=True)
            p = jnp.exp(s)
            attn = p / jnp.sum(p, axis=-1, keepdims=True)   # exact softmax
            attn_ref[h] = attn
            ctx_heads.append(
                jnp.einsum('qk,ke->qe', attn.astype(bf16), vh,
                           preferred_element_type=jnp.float32))

        # Merge heads with one small lane concat, then a single K=32 output
        # projection (replaces the per-head K=8 matmul chain).
        ctx = jnp.concatenate(ctx_heads, axis=-1)           # (Lq, D)
        out = jnp.dot(ctx.astype(bf16), wo_ref[...].astype(bf16),
                      preferred_element_type=jnp.float32) + bo_ref[...]

        ln = ln_ref[...]
        return _layer_norm(xq + out, ln[0], ln[1])

    # attention1: self-attention (key = value = query = dec_inputs)
    dec1 = mha(dec, dec, wqkv1_ref, bqkv1_ref, wo1_ref, bo1_ref, ln1_ref,
               self_attn_ref, True)
    # attention2: cross-attention (key = value = enc_outputs, query = dec1)
    dec2 = mha(dec1, enc, wqkv2_ref, bqkv2_ref, wo2_ref, bo2_ref, ln2_ref,
               ctx_attn_ref, False)

    # PositionalWiseFeedForward: Conv1d(k=1) -> ReLU -> Conv1d(k=1),
    # residual + LN.  bf16 operands, f32 accumulate.
    hid = jnp.dot(dec2.astype(bf16), fw1_ref[...].astype(bf16),
                  preferred_element_type=jnp.float32) + fb1_ref[...]
    hid = jnp.maximum(hid, 0.0)
    ff = jnp.dot(hid.astype(bf16), fw2_ref[...].astype(bf16),
                 preferred_element_type=jnp.float32) + fb2_ref[...]
    fln = fln_ref[...]
    out_ref[...] = _layer_norm(dec2 + ff, fln[0], fln[1]).astype(out_ref.dtype)

    # TODO(synk): attn_mask / dropout paths omitted (mask=None, dropout=0.0 in
    #             the module defaults).
    # TODO(synk): the three outputs have last dims 32/8/16 (< 128 lanes) so
    #             they lower to masked stores; only ~4 KiB total, so packing
    #             them lane-dense was deliberately skipped (perf review #7).


def _prep_mha_params(w, b):
    """Repack (4,D,D)/(4,D) MHA params into fused full-width kernel operands.

    w[i] is (in, out); columns 0..D-1 of the fused weight are Wq, D..2D-1 Wk,
    2D..3D-1 Wv.  No batch tiling (perf review #4).
    """
    D = MODEL_DIM
    wqkv = jnp.concatenate([w[0], w[1], w[2]], axis=1)       # (D, 3D)
    bqkv = jnp.concatenate([b[0], b[1], b[2]])[None, :]      # (1, 3D)
    wo = w[3]                                                # (D, D)
    bo = b[3][None, :]                                       # (1, D)
    return wqkv, bqkv, wo, bo


def decoder_layer(dec_inputs, enc_outputs, params):
    (w1, b1, ln1, w2, b2, ln2, fw1, fb1, fw2, fb2, fln) = params
    B, Ld, D = dec_inputs.shape
    _, Le, _ = enc_outputs.shape
    H = NUM_HEADS

    wqkv1, bqkv1, wo1, bo1 = _prep_mha_params(w1, b1)
    wqkv2, bqkv2, wo2, bo2 = _prep_mha_params(w2, b2)

    weights = (wqkv1, bqkv1, wo1, bo1, ln1,
               wqkv2, bqkv2, wo2, bo2, ln2,
               fw1, fb1, fw2, fb2, fln)

    def bcast_spec(x):
        # Whole (small) array, same block for every grid step.
        zeros = (0,) * x.ndim
        return pl.BlockSpec(x.shape, lambda b: zeros)

    in_specs = ([pl.BlockSpec((None, Ld, D), lambda b: (b, 0, 0)),   # dec
                 pl.BlockSpec((None, Le, D), lambda b: (b, 0, 0))]   # enc
                + [bcast_spec(x) for x in weights])

    out_shapes = (
        jax.ShapeDtypeStruct((B, Ld, D), jnp.float32),        # decoder output
        jax.ShapeDtypeStruct((B, H, Ld, Ld), jnp.float32),    # self-attn probs
        jax.ShapeDtypeStruct((B, H, Ld, Le), jnp.float32),    # cross-attn probs
    )
    out_specs = [
        pl.BlockSpec((None, Ld, D), lambda b: (b, 0, 0)),
        pl.BlockSpec((None, H, Ld, Ld), lambda b: (b, 0, 0, 0)),
        pl.BlockSpec((None, H, Ld, Le), lambda b: (b, 0, 0, 0)),
    ]

    grid_spec = pltpu.PrefetchScalarGridSpec(
        num_scalar_prefetch=0,
        grid=(B,),                      # "parallel" -> sharded over the 2 TCs on v7x
        in_specs=in_specs,
        out_specs=out_specs,
    )

    out, self_attn, ctx_attn = pl.pallas_call(
        decoder_layer_kernel,
        out_shape=out_shapes,
        grid_spec=grid_spec,
        compiler_params=pltpu.CompilerParams(
            dimension_semantics=("parallel",)),
    )(dec_inputs, enc_outputs, *weights)

    return out, self_attn, ctx_attn


# ---------------- pure-JAX reference (for sanity check) ----------------
def _ln_ref(x, g, b):
    mu = jnp.mean(x, axis=-1, keepdims=True)
    var = jnp.mean((x - mu) ** 2, axis=-1, keepdims=True)
    return (x - mu) * jax.lax.rsqrt(var + LN_EPS) * g + b


def _mha_ref(x_q, x_kv, w, b, ln):
    q = x_q @ w[0] + b[0]
    k = x_kv @ w[1] + b[1]
    v = x_kv @ w[2] + b[2]
    B, Lq, D = x_q.shape
    Lk = x_kv.shape[1]
    qh = q.reshape(B, Lq, NUM_HEADS, DIM_PER_HEAD).transpose(0, 2, 1, 3)
    kh = k.reshape(B, Lk, NUM_HEADS, DIM_PER_HEAD).transpose(0, 2, 1, 3)
    vh = v.reshape(B, Lk, NUM_HEADS, DIM_PER_HEAD).transpose(0, 2, 1, 3)
    scores = jnp.einsum("bhqd,bhkd->bhqk", qh, kh) * SCALE
    attn = jax.nn.softmax(scores, axis=-1)
    ctx = jnp.einsum("bhqk,bhkd->bhqd", attn, vh)
    ctx = ctx.transpose(0, 2, 1, 3).reshape(B, Lq, D)
    out = ctx @ w[3] + b[3]
    return _ln_ref(x_q + out, ln[0], ln[1]), attn


def _decoder_layer_ref(dec, enc, params):
    (w1, b1, ln1, w2, b2, ln2, fw1, fb1, fw2, fb2, fln) = params
    d1, sa = _mha_ref(dec, dec, w1, b1, ln1)
    d2, ca = _mha_ref(d1, enc, w2, b2, ln2)
    hid = jnp.maximum(d2 @ fw1 + fb1[0], 0.0)
    ff = hid @ fw2 + fb2[0]
    out = _ln_ref(d2 + ff, fln[0], fln[1])
    return out, sa, ca


def init_params(key):
    ks = jax.random.split(key, 16)
    s = 0.1
    D, F = MODEL_DIM, FFN_DIM

    def ln_params(k):
        a, b = jax.random.split(k)
        return jnp.stack([1.0 + s * jax.random.normal(a, (D,), jnp.float32),
                          s * jax.random.normal(b, (D,), jnp.float32)])

    w1 = s * jax.random.normal(ks[0], (4, D, D), jnp.float32)
    b1 = s * jax.random.normal(ks[1], (4, D), jnp.float32)
    ln1 = ln_params(ks[2])
    w2 = s * jax.random.normal(ks[3], (4, D, D), jnp.float32)
    b2 = s * jax.random.normal(ks[4], (4, D), jnp.float32)
    ln2 = ln_params(ks[5])
    fw1 = s * jax.random.normal(ks[6], (D, F), jnp.float32)
    fb1 = s * jax.random.normal(ks[7], (1, F), jnp.float32)
    fw2 = s * jax.random.normal(ks[8], (F, D), jnp.float32)
    fb2 = s * jax.random.normal(ks[9], (1, D), jnp.float32)
    fln = ln_params(ks[10])
    return (w1, b1, ln1, w2, b2, ln2, fw1, fb1, fw2, fb2, fln)


if __name__ == "__main__":
    key = jax.random.PRNGKey(0)
    k_dec, k_enc, k_par = jax.random.split(key, 3)

    B, L_DEC, L_ENC = 2, 8, 16
    dec_inputs = jax.random.normal(k_dec, (B, L_DEC, MODEL_DIM), jnp.float32)
    enc_outputs = jax.random.normal(k_enc, (B, L_ENC, MODEL_DIM), jnp.float32)
    params = init_params(k_par)

    out, self_attn, ctx_attn = decoder_layer(dec_inputs, enc_outputs, params)
    jax.block_until_ready((out, self_attn, ctx_attn))

    ref_out, ref_sa, ref_ca = _decoder_layer_ref(dec_inputs, enc_outputs, params)
    assert out.shape == (B, L_DEC, MODEL_DIM)
    assert self_attn.shape == (B, NUM_HEADS, L_DEC, L_DEC)
    assert ctx_attn.shape == (B, NUM_HEADS, L_DEC, L_ENC)
    # Tolerance accounts for bf16 MXU operands (per perf review) across the six
    # chained matmul + layer-norm stages; the reference is full f32.  The
    # attention maps use an exact softmax divide (rows sum to 1).
    assert jnp.allclose(self_attn, ref_sa, atol=2e-2, rtol=2e-2)
    assert jnp.allclose(ctx_attn, ref_ca, atol=2e-2, rtol=2e-2)
    assert jnp.allclose(out, ref_out, atol=2e-2, rtol=2e-2)

    print("KERNEL_OK")
</pallas_src>

<mosaic_0001>
module attributes {stable_mosaic.version = 11 : i64} {
  func.func @decoder_layer_kernel(%arg0: i32, %arg1: memref<1x8x32xf32, #tpu.memory_space<vmem>>, %arg2: memref<1x16x32xf32, #tpu.memory_space<vmem>>, %arg3: memref<32x96xf32, #tpu.memory_space<vmem>>, %arg4: memref<1x96xf32, #tpu.memory_space<vmem>>, %arg5: memref<32x32xf32, #tpu.memory_space<vmem>>, %arg6: memref<1x32xf32, #tpu.memory_space<vmem>>, %arg7: memref<2x32xf32, #tpu.memory_space<vmem>>, %arg8: memref<32x96xf32, #tpu.memory_space<vmem>>, %arg9: memref<1x96xf32, #tpu.memory_space<vmem>>, %arg10: memref<32x32xf32, #tpu.memory_space<vmem>>, %arg11: memref<1x32xf32, #tpu.memory_space<vmem>>, %arg12: memref<2x32xf32, #tpu.memory_space<vmem>>, %arg13: memref<32x64xf32, #tpu.memory_space<vmem>>, %arg14: memref<1x64xf32, #tpu.memory_space<vmem>>, %arg15: memref<64x32xf32, #tpu.memory_space<vmem>>, %arg16: memref<1x32xf32, #tpu.memory_space<vmem>>, %arg17: memref<2x32xf32, #tpu.memory_space<vmem>>, %arg18: memref<1x8x32xf32, #tpu.memory_space<vmem>>, %arg19: memref<1x4x8x8xf32, #tpu.memory_space<vmem>>, %arg20: memref<1x4x8x16xf32, #tpu.memory_space<vmem>>) attributes {dimension_semantics = [#tpu.dimension_semantics<parallel>], iteration_bounds = array<i64: 2>, scalar_prefetch = 0 : i64, scratch_operands = 0 : i64, tpu.core_type = #tpu.core_type<tc>, window_params = [{transform_indices = @transform_0, window_bounds = array<i64: 1, 8, 32>}, {transform_indices = @transform_1, window_bounds = array<i64: 1, 16, 32>}, {pipeline_mode = #tpu.pipeline_mode<synchronous>, transform_indices = @transform_2, window_bounds = array<i64: 32, 96>}, {pipeline_mode = #tpu.pipeline_mode<synchronous>, transform_indices = @transform_3, window_bounds = array<i64: 1, 96>}, {pipeline_mode = #tpu.pipeline_mode<synchronous>, transform_indices = @transform_4, window_bounds = array<i64: 32, 32>}, {pipeline_mode = #tpu.pipeline_mode<synchronous>, transform_indices = @transform_5, window_bounds = array<i64: 1, 32>}, {pipeline_mode = #tpu.pipeline_mode<synchronous>, transform_indices = @transform_6, window_bounds = array<i64: 2, 32>}, {pipeline_mode = #tpu.pipeline_mode<synchronous>, transform_indices = @transform_7, window_bounds = array<i64: 32, 96>}, {pipeline_mode = #tpu.pipeline_mode<synchronous>, transform_indices = @transform_8, window_bounds = array<i64: 1, 96>}, {pipeline_mode = #tpu.pipeline_mode<synchronous>, transform_indices = @transform_9, window_bounds = array<i64: 32, 32>}, {pipeline_mode = #tpu.pipeline_mode<synchronous>, transform_indices = @transform_10, window_bounds = array<i64: 1, 32>}, {pipeline_mode = #tpu.pipeline_mode<synchronous>, transform_indices = @transform_11, window_bounds = array<i64: 2, 32>}, {pipeline_mode = #tpu.pipeline_mode<synchronous>, transform_indices = @transform_12, window_bounds = array<i64: 32, 64>}, {pipeline_mode = #tpu.pipeline_mode<synchronous>, transform_indices = @transform_13, window_bounds = array<i64: 1, 64>}, {pipeline_mode = #tpu.pipeline_mode<synchronous>, transform_indices = @transform_14, window_bounds = array<i64: 64, 32>}, {pipeline_mode = #tpu.pipeline_mode<synchronous>, transform_indices = @transform_15, window_bounds = array<i64: 1, 32>}, {pipeline_mode = #tpu.pipeline_mode<synchronous>, transform_indices = @transform_16, window_bounds = array<i64: 2, 32>}, {transform_indices = @transform_17, window_bounds = array<i64: 1, 8, 32>}, {transform_indices = @transform_18, window_bounds = array<i64: 1, 4, 8, 8>}, {transform_indices = @transform_19, window_bounds = array<i64: 1, 4, 8, 16>}]} {
    %c0 = arith.constant 0 : index
    %c0_0 = arith.constant 0 : index
    %c0_1 = arith.constant 0 : index
    %0 = vector.load %arg1[%c0, %c0_0, %c0_1] : memref<1x8x32xf32, #tpu.memory_space<vmem>>, vector<1x8x32xf32>
    %1 = vector.shape_cast %0 : vector<1x8x32xf32> to vector<8x32xf32>
    %c0_2 = arith.constant 0 : index
    %c0_3 = arith.constant 0 : index
    %c0_4 = arith.constant 0 : index
    %2 = vector.load %arg2[%c0_2, %c0_3, %c0_4] : memref<1x16x32xf32, #tpu.memory_space<vmem>>, vector<1x16x32xf32>
    %3 = vector.shape_cast %2 : vector<1x16x32xf32> to vector<16x32xf32>
    %c0_5 = arith.constant 0 : index
    %c0_6 = arith.constant 0 : index
    %4 = vector.load %arg3[%c0_5, %c0_6] : memref<32x96xf32, #tpu.memory_space<vmem>>, vector<32x96xf32>
    %5 = arith.truncf %4 : vector<32x96xf32> to vector<32x96xbf16>
    %c0_7 = arith.constant 0 : index
    %c0_8 = arith.constant 0 : index
    %6 = vector.load %arg4[%c0_7, %c0_8] : memref<1x96xf32, #tpu.memory_space<vmem>>, vector<1x96xf32>
    %7 = arith.truncf %1 : vector<8x32xf32> to vector<8x32xbf16>
    %cst = arith.constant dense<0.000000e+00> : vector<8x96xf32>
    %8 = tpu.matmul %7, %5, %cst {dimension_numbers = #tpu.dot_dimension_numbers<[1], [0], [0], [1], [0, 0, 1, 1], [], []>} : vector<8x32xbf16>, vector<32x96xbf16>, vector<8x96xf32> -> vector<8x96xf32>
    %9 = vector.broadcast %6 : vector<1x96xf32> to vector<8x96xf32>
    %10 = arith.addf %8, %9 : vector<8x96xf32>
    %11 = vector.extract_strided_slice %10 {offsets = [0, 0], sizes = [8, 32], strides = [1, 1]} : vector<8x96xf32> to vector<8x32xf32>
    %12 = vector.extract_strided_slice %10 {offsets = [0, 32], sizes = [8, 32], strides = [1, 1]} : vector<8x96xf32> to vector<8x32xf32>
    %13 = vector.extract_strided_slice %10 {offsets = [0, 64], sizes = [8, 32], strides = [1, 1]} : vector<8x96xf32> to vector<8x32xf32>
    %14 = vector.extract_strided_slice %11 {offsets = [0, 0], sizes = [8, 8], strides = [1, 1]} : vector<8x32xf32> to vector<8x8xf32>
    %15 = arith.truncf %14 : vector<8x8xf32> to vector<8x8xbf16>
    %16 = vector.extract_strided_slice %12 {offsets = [0, 0], sizes = [8, 8], strides = [1, 1]} : vector<8x32xf32> to vector<8x8xf32>
    %17 = arith.truncf %16 : vector<8x8xf32> to vector<8x8xbf16>
    %18 = vector.extract_strided_slice %13 {offsets = [0, 0], sizes = [8, 8], strides = [1, 1]} : vector<8x32xf32> to vector<8x8xf32>
    %19 = arith.truncf %18 : vector<8x8xf32> to vector<8x8xbf16>
    "tpu.trace_start"() <{level = 10 : i32, message = "qe,ke->qk"}> : () -> ()
    %cst_9 = arith.constant dense<0.000000e+00> : vector<8x8xf32>
    %20 = tpu.matmul %15, %17, %cst_9 {dimension_numbers = #tpu.dot_dimension_numbers<[1], [1], [0], [0], [0, 0, 1, 0], [], []>} : vector<8x8xbf16>, vector<8x8xbf16>, vector<8x8xf32> -> vector<8x8xf32>
    "tpu.trace_stop"() : () -> ()
    %cst_10 = arith.constant 0.707106769 : f32
    %21 = vector.broadcast %cst_10 : f32 to vector<8x8xf32>
    %22 = arith.mulf %20, %21 : vector<8x8xf32>
    %cst_11 = arith.constant dense<0xFF800000> : vector<8xf32>
    %23 = vector.multi_reduction <maximumf>, %22, %cst_11 [1] : vector<8x8xf32> to vector<8xf32>
    %24 = vector.shape_cast %23 : vector<8xf32> to vector<8x1xf32>
    %25 = vector.broadcast %24 : vector<8x1xf32> to vector<8x8xf32>
    %26 = arith.subf %22, %25 : vector<8x8xf32>
    %27 = math.exp %26 : vector<8x8xf32>
    %cst_12 = arith.constant dense<0.000000e+00> : vector<8xf32>
    %28 = vector.multi_reduction <add>, %27, %cst_12 [1] : vector<8x8xf32> to vector<8xf32>
    %29 = vector.shape_cast %28 : vector<8xf32> to vector<8x1xf32>
    %30 = vector.broadcast %29 : vector<8x1xf32> to vector<8x8xf32>
    %31 = arith.divf %27, %30 : vector<8x8xf32>
    %c0_13 = arith.constant 0 : index
    %c0_14 = arith.constant 0 : index
    %c0_15 = arith.constant 0 : index
    %c0_16 = arith.constant 0 : index
    %32 = vector.load %arg19[%c0_13, %c0_14, %c0_15, %c0_16] : memref<1x4x8x8xf32, #tpu.memory_space<vmem>>, vector<1x1x8x8xf32>
    %33 = vector.shape_cast %32 : vector<1x1x8x8xf32> to vector<8x8xf32>
    %34 = vector.shape_cast %31 : vector<8x8xf32> to vector<1x1x8x8xf32>
    tpu.vector_store %arg19[%c0_13, %c0_14, %c0_15, %c0_16], %34 {strides = array<i32>} : memref<1x4x8x8xf32, #tpu.memory_space<vmem>>, vector<1x1x8x8xf32>,
    %35 = arith.truncf %31 : vector<8x8xf32> to vector<8x8xbf16>
    "tpu.trace_start"() <{level = 10 : i32, message = "qk,ke->qe"}> : () -> ()
    %cst_17 = arith.constant dense<0.000000e+00> : vector<8x8xf32>
    %36 = tpu.matmul %35, %19, %cst_17 {dimension_numbers = #tpu.dot_dimension_numbers<[1], [0], [0], [1], [0, 0, 1, 1], [], []>} : vector<8x8xbf16>, vector<8x8xbf16>, vector<8x8xf32> -> vector<8x8xf32>
    "tpu.trace_stop"() : () -> ()
    %37 = vector.extract_strided_slice %11 {offsets = [0, 8], sizes = [8, 8], strides = [1, 1]} : vector<8x32xf32> to vector<8x8xf32>
    %38 = arith.truncf %37 : vector<8x8xf32> to vector<8x8xbf16>
    %39 = vector.extract_strided_slice %12 {offsets = [0, 8], sizes = [8, 8], strides = [1, 1]} : vector<8x32xf32> to vector<8x8xf32>
    %40 = arith.truncf %39 : vector<8x8xf32> to vector<8x8xbf16>
    %41 = vector.extract_strided_slice %13 {offsets = [0, 8], sizes = [8, 8], strides = [1, 1]} : vector<8x32xf32> to vector<8x8xf32>
    %42 = arith.truncf %41 : vector<8x8xf32> to vector<8x8xbf16>
    "tpu.trace_start"() <{level = 10 : i32, message = "qe,ke->qk"}> : () -> ()
    %cst_18 = arith.constant dense<0.000000e+00> : vector<8x8xf32>
    %43 = tpu.matmul %38, %40, %cst_18 {dimension_numbers = #tpu.dot_dimension_numbers<[1], [1], [0], [0], [0, 0, 1, 0], [], []>} : vector<8x8xbf16>, vector<8x8xbf16>, vector<8x8xf32> -> vector<8x8xf32>
    "tpu.trace_stop"() : () -> ()
    %cst_19 = arith.constant 0.707106769 : f32
    %44 = vector.broadcast %cst_19 : f32 to vector<8x8xf32>
    %45 = arith.mulf %43, %44 : vector<8x8xf32>
    %cst_20 = arith.constant dense<0xFF800000> : vector<8xf32>
    %46 = vector.multi_reduction <maximumf>, %45, %cst_20 [1] : vector<8x8xf32> to vector<8xf32>
    %47 = vector.shape_cast %46 : vector<8xf32> to vector<8x1xf32>
    %48 = vector.broadcast %47 : vector<8x1xf32> to vector<8x8xf32>
    %49 = arith.subf %45, %48 : vector<8x8xf32>
    %50 = math.exp %49 : vector<8x8xf32>
    %cst_21 = arith.constant dense<0.000000e+00> : vector<8xf32>
    %51 = vector.multi_reduction <add>, %50, %cst_21 [1] : vector<8x8xf32> to vector<8xf32>
    %52 = vector.shape_cast %51 : vector<8xf32> to vector<8x1xf32>
    %53 = vector.broadcast %52 : vector<8x1xf32> to vector<8x8xf32>
    %54 = arith.divf %50, %53 : vector<8x8xf32>
    %c0_22 = arith.constant 0 : index
    %c1 = arith.constant 1 : index
    %c0_23 = arith.constant 0 : index
    %c0_24 = arith.constant 0 : index
    %55 = vector.load %arg19[%c0_22, %c1, %c0_23, %c0_24] : memref<1x4x8x8xf32, #tpu.memory_space<vmem>>, vector<1x1x8x8xf32>
    %56 = vector.shape_cast %55 : vector<1x1x8x8xf32> to vector<8x8xf32>
    %57 = vector.shape_cast %54 : vector<8x8xf32> to vector<1x1x8x8xf32>
    tpu.vector_store %arg19[%c0_22, %c1, %c0_23, %c0_24], %57 {strides = array<i32>} : memref<1x4x8x8xf32, #tpu.memory_space<vmem>>, vector<1x1x8x8xf32>,
    %58 = arith.truncf %54 : vector<8x8xf32> to vector<8x8xbf16>
    "tpu.trace_start"() <{level = 10 : i32, message = "qk,ke->qe"}> : () -> ()
    %cst_25 = arith.constant dense<0.000000e+00> : vector<8x8xf32>
    %59 = tpu.matmul %58, %42, %cst_25 {dimension_numbers = #tpu.dot_dimension_numbers<[1], [0], [0], [1], [0, 0, 1, 1], [], []>} : vector<8x8xbf16>, vector<8x8xbf16>, vector<8x8xf32> -> vector<8x8xf32>
    "tpu.trace_stop"() : () -> ()
    %60 = vector.extract_strided_slice %11 {offsets = [0, 16], sizes = [8, 8], strides = [1, 1]} : vector<8x32xf32> to vector<8x8xf32>
    %61 = arith.truncf %60 : vector<8x8xf32> to vector<8x8xbf16>
    %62 = vector.extract_strided_slice %12 {offsets = [0, 16], sizes = [8, 8], strides = [1, 1]} : vector<8x32xf32> to vector<8x8xf32>
    %63 = arith.truncf %62 : vector<8x8xf32> to vector<8x8xbf16>
    %64 = vector.extract_strided_slice %13 {offsets = [0, 16], sizes = [8, 8], strides = [1, 1]} : vector<8x32xf32> to vector<8x8xf32>
    %65 = arith.truncf %64 : vector<8x8xf32> to vector<8x8xbf16>
    "tpu.trace_start"() <{level = 10 : i32, message = "qe,ke->qk"}> : () -> ()
    %cst_26 = arith.constant dense<0.000000e+00> : vector<8x8xf32>
    %66 = tpu.matmul %61, %63, %cst_26 {dimension_numbers = #tpu.dot_dimension_numbers<[1], [1], [0], [0], [0, 0, 1, 0], [], []>} : vector<8x8xbf16>, vector<8x8xbf16>, vector<8x8xf32> -> vector<8x8xf32>
    "tpu.trace_stop"() : () -> ()
    %cst_27 = arith.constant 0.707106769 : f32
    %67 = vector.broadcast %cst_27 : f32 to vector<8x8xf32>
    %68 = arith.mulf %66, %67 : vector<8x8xf32>
    %cst_28 = arith.constant dense<0xFF800000> : vector<8xf32>
    %69 = vector.multi_reduction <maximumf>, %68, %cst_28 [1] : vector<8x8xf32> to vector<8xf32>
    %70 = vector.shape_cast %69 : vector<8xf32> to vector<8x1xf32>
    %71 = vector.broadcast %70 : vector<8x1xf32> to vector<8x8xf32>
    %72 = arith.subf %68, %71 : vector<8x8xf32>
    %73 = math.exp %72 : vector<8x8xf32>
    %cst_29 = arith.constant dense<0.000000e+00> : vector<8xf32>
    %74 = vector.multi_reduction <add>, %73, %cst_29 [1] : vector<8x8xf32> to vector<8xf32>
    %75 = vector.shape_cast %74 : vector<8xf32> to vector<8x1xf32>
    %76 = vector.broadcast %75 : vector<8x1xf32> to vector<8x8xf32>
    %77 = arith.divf %73, %76 : vector<8x8xf32>
    %c0_30 = arith.constant 0 : index
    %c2 = arith.constant 2 : index
    %c0_31 = arith.constant 0 : index
    %c0_32 = arith.constant 0 : index
    %78 = vector.load %arg19[%c0_30, %c2, %c0_31, %c0_32] : memref<1x4x8x8xf32, #tpu.memory_space<vmem>>, vector<1x1x8x8xf32>
    %79 = vector.shape_cast %78 : vector<1x1x8x8xf32> to vector<8x8xf32>
    %80 = vector.shape_cast %77 : vector<8x8xf32> to vector<1x1x8x8xf32>
    tpu.vector_store %arg19[%c0_30, %c2, %c0_31, %c0_32], %80 {strides = array<i32>} : memref<1x4x8x8xf32, #tpu.memory_space<vmem>>, vector<1x1x8x8xf32>,
    %81 = arith.truncf %77 : vector<8x8xf32> to vector<8x8xbf16>
    "tpu.trace_start"() <{level = 10 : i32, message = "qk,ke->qe"}> : () -> ()
    %cst_33 = arith.constant dense<0.000000e+00> : vector<8x8xf32>
    %82 = tpu.matmul %81, %65, %cst_33 {dimension_numbers = #tpu.dot_dimension_numbers<[1], [0], [0], [1], [0, 0, 1, 1], [], []>} : vector<8x8xbf16>, vector<8x8xbf16>, vector<8x8xf32> -> vector<8x8xf32>
    "tpu.trace_stop"() : () -> ()
    %83 = vector.extract_strided_slice %11 {offsets = [0, 24], sizes = [8, 8], strides = [1, 1]} : vector<8x32xf32> to vector<8x8xf32>
    %84 = arith.truncf %83 : vector<8x8xf32> to vector<8x8xbf16>
    %85 = vector.extract_strided_slice %12 {offsets = [0, 24], sizes = [8, 8], strides = [1, 1]} : vector<8x32xf32> to vector<8x8xf32>
    %86 = arith.truncf %85 : vector<8x8xf32> to vector<8x8xbf16>
    %87 = vector.extract_strided_slice %13 {offsets = [0, 24], sizes = [8, 8], strides = [1, 1]} : vector<8x32xf32> to vector<8x8xf32>
    %88 = arith.truncf %87 : vector<8x8xf32> to vector<8x8xbf16>
    "tpu.trace_start"() <{level = 10 : i32, message = "qe,ke->qk"}> : () -> ()
    %cst_34 = arith.constant dense<0.000000e+00> : vector<8x8xf32>
    %89 = tpu.matmul %84, %86, %cst_34 {dimension_numbers = #tpu.dot_dimension_numbers<[1], [1], [0], [0], [0, 0, 1, 0], [], []>} : vector<8x8xbf16>, vector<8x8xbf16>, vector<8x8xf32> -> vector<8x8xf32>
    "tpu.trace_stop"() : () -> ()
    %cst_35 = arith.constant 0.707106769 : f32
    %90 = vector.broadcast %cst_35 : f32 to vector<8x8xf32>
    %91 = arith.mulf %89, %90 : vector<8x8xf32>
    %cst_36 = arith.constant dense<0xFF800000> : vector<8xf32>
    %92 = vector.multi_reduction <maximumf>, %91, %cst_36 [1] : vector<8x8xf32> to vector<8xf32>
    %93 = vector.shape_cast %92 : vector<8xf32> to vector<8x1xf32>
    %94 = vector.broadcast %93 : vector<8x1xf32> to vector<8x8xf32>
    %95 = arith.subf %91, %94 : vector<8x8xf32>
    %96 = math.exp %95 : vector<8x8xf32>
    %cst_37 = arith.constant dense<0.000000e+00> : vector<8xf32>
    %97 = vector.multi_reduction <add>, %96, %cst_37 [1] : vector<8x8xf32> to vector<8xf32>
    %98 = vector.shape_cast %97 : vector<8xf32> to vector<8x1xf32>
    %99 = vector.broadcast %98 : vector<8x1xf32> to vector<8x8xf32>
    %100 = arith.divf %96, %99 : vector<8x8xf32>
    %c0_38 = arith.constant 0 : index
    %c3 = arith.constant 3 : index
    %c0_39 = arith.constant 0 : index
    %c0_40 = arith.constant 0 : index
    %101 = vector.load %arg19[%c0_38, %c3, %c0_39, %c0_40] : memref<1x4x8x8xf32, #tpu.memory_space<vmem>>, vector<1x1x8x8xf32>
    %102 = vector.shape_cast %101 : vector<1x1x8x8xf32> to vector<8x8xf32>
    %103 = vector.shape_cast %100 : vector<8x8xf32> to vector<1x1x8x8xf32>
    tpu.vector_store %arg19[%c0_38, %c3, %c0_39, %c0_40], %103 {strides = array<i32>} : memref<1x4x8x8xf32, #tpu.memory_space<vmem>>, vector<1x1x8x8xf32>,
    %104 = arith.truncf %100 : vector<8x8xf32> to vector<8x8xbf16>
    "tpu.trace_start"() <{level = 10 : i32, message = "qk,ke->qe"}> : () -> ()
    %cst_41 = arith.constant dense<0.000000e+00> : vector<8x8xf32>
    %105 = tpu.matmul %104, %88, %cst_41 {dimension_numbers = #tpu.dot_dimension_numbers<[1], [0], [0], [1], [0, 0, 1, 1], [], []>} : vector<8x8xbf16>, vector<8x8xbf16>, vector<8x8xf32> -> vector<8x8xf32>
    "tpu.trace_stop"() : () -> ()
    %106 = tpu.concatenate %36, %59, %82, %105 in 1 : vector<8x8xf32>, vector<8x8xf32>, vector<8x8xf32>, vector<8x8xf32> -> vector<8x32xf32>
    %107 = arith.truncf %106 : vector<8x32xf32> to vector<8x32xbf16>
    %c0_42 = arith.constant 0 : index
    %c0_43 = arith.constant 0 : index
    %108 = vector.load %arg5[%c0_42, %c0_43] : memref<32x32xf32, #tpu.memory_space<vmem>>, vector<32x32xf32>
    %109 = arith.truncf %108 : vector<32x32xf32> to vector<32x32xbf16>
    %cst_44 = arith.constant dense<0.000000e+00> : vector<8x32xf32>
    %110 = tpu.matmul %107, %109, %cst_44 {dimension_numbers = #tpu.dot_dimension_numbers<[1], [0], [0], [1], [0, 0, 1, 1], [], []>} : vector<8x32xbf16>, vector<32x32xbf16>, vector<8x32xf32> -> vector<8x32xf32>
    %c0_45 = arith.constant 0 : index
    %c0_46 = arith.constant 0 : index
    %111 = vector.load %arg6[%c0_45, %c0_46] : memref<1x32xf32, #tpu.memory_space<vmem>>, vector<1x32xf32>
    %112 = vector.broadcast %111 : vector<1x32xf32> to vector<8x32xf32>
    %113 = arith.addf %110, %112 : vector<8x32xf32>
    %c0_47 = arith.constant 0 : index
    %c0_48 = arith.constant 0 : index
    %114 = vector.load %arg7[%c0_47, %c0_48] : memref<2x32xf32, #tpu.memory_space<vmem>>, vector<2x32xf32>
    %115 = arith.addf %1, %113 : vector<8x32xf32>
    %116 = vector.extract_strided_slice %114 {offsets = [0, 0], sizes = [1, 32], strides = [1, 1]} : vector<2x32xf32> to vector<1x32xf32>
    %117 = vector.shape_cast %116 : vector<1x32xf32> to vector<32xf32>
    %118 = vector.extract_strided_slice %114 {offsets = [1, 0], sizes = [1, 32], strides = [1, 1]} : vector<2x32xf32> to vector<1x32xf32>
    %119 = vector.shape_cast %118 : vector<1x32xf32> to vector<32xf32>
    %cst_49 = arith.constant dense<0.000000e+00> : vector<8xf32>
    %120 = vector.multi_reduction <add>, %115, %cst_49 [1] : vector<8x32xf32> to vector<8xf32>
    %121 = vector.shape_cast %120 : vector<8xf32> to vector<8x1xf32>
    %cst_50 = arith.constant 3.200000e+01 : f32
    %122 = vector.broadcast %cst_50 : f32 to vector<8x1xf32>
    %123 = arith.divf %121, %122 : vector<8x1xf32>
    %124 = vector.broadcast %123 : vector<8x1xf32> to vector<8x32xf32>
    %125 = arith.subf %115, %124 : vector<8x32xf32>
    %126 = arith.mulf %125, %125 : vector<8x32xf32>
    %cst_51 = arith.constant dense<0.000000e+00> : vector<8xf32>
    %127 = vector.multi_reduction <add>, %126, %cst_51 [1] : vector<8x32xf32> to vector<8xf32>
    %128 = vector.shape_cast %127 : vector<8xf32> to vector<8x1xf32>
    %cst_52 = arith.constant 3.200000e+01 : f32
    %129 = vector.broadcast %cst_52 : f32 to vector<8x1xf32>
    %130 = arith.divf %128, %129 : vector<8x1xf32>
    %cst_53 = arith.constant 9.99999974E-6 : f32
    %131 = vector.broadcast %cst_53 : f32 to vector<8x1xf32>
    %132 = arith.addf %130, %131 : vector<8x1xf32>
    %133 = math.rsqrt %132 : vector<8x1xf32>
    %134 = vector.broadcast %133 : vector<8x1xf32> to vector<8x32xf32>
    %135 = arith.mulf %125, %134 : vector<8x32xf32>
    %136 = vector.shape_cast %117 : vector<32xf32> to vector<1x32xf32>
    %137 = vector.broadcast %136 : vector<1x32xf32> to vector<8x32xf32>
    %138 = arith.mulf %135, %137 : vector<8x32xf32>
    %139 = vector.shape_cast %119 : vector<32xf32> to vector<1x32xf32>
    %140 = vector.broadcast %139 : vector<1x32xf32> to vector<8x32xf32>
    %141 = arith.addf %138, %140 : vector<8x32xf32>
    %c0_54 = arith.constant 0 : index
    %c0_55 = arith.constant 0 : index
    %142 = vector.load %arg8[%c0_54, %c0_55] : memref<32x96xf32, #tpu.memory_space<vmem>>, vector<32x96xf32>
    %143 = arith.truncf %142 : vector<32x96xf32> to vector<32x96xbf16>
    %c0_56 = arith.constant 0 : index
    %c0_57 = arith.constant 0 : index
    %144 = vector.load %arg9[%c0_56, %c0_57] : memref<1x96xf32, #tpu.memory_space<vmem>>, vector<1x96xf32>
    %145 = arith.truncf %141 : vector<8x32xf32> to vector<8x32xbf16>
    %146 = vector.extract_strided_slice %143 {offsets = [0, 0], sizes = [32, 32], strides = [1, 1]} : vector<32x96xbf16> to vector<32x32xbf16>
    %cst_58 = arith.constant dense<0.000000e+00> : vector<8x32xf32>
    %147 = tpu.matmul %145, %146, %cst_58 {dimension_numbers = #tpu.dot_dimension_numbers<[1], [0], [0], [1], [0, 0, 1, 1], [], []>} : vector<8x32xbf16>, vector<32x32xbf16>, vector<8x32xf32> -> vector<8x32xf32>
    %148 = vector.extract_strided_slice %144 {offsets = [0, 0], sizes = [1, 32], strides = [1, 1]} : vector<1x96xf32> to vector<1x32xf32>
    %149 = vector.broadcast %148 : vector<1x32xf32> to vector<8x32xf32>
    %150 = arith.addf %147, %149 : vector<8x32xf32>
    %151 = arith.truncf %3 : vector<16x32xf32> to vector<16x32xbf16>
    %152 = vector.extract_strided_slice %143 {offsets = [0, 32], sizes = [32, 64], strides = [1, 1]} : vector<32x96xbf16> to vector<32x64xbf16>
    %cst_59 = arith.constant dense<0.000000e+00> : vector<16x64xf32>
    %153 = tpu.matmul %151, %152, %cst_59 {dimension_numbers = #tpu.dot_dimension_numbers<[1], [0], [0], [1], [0, 0, 1, 1], [], []>} : vector<16x32xbf16>, vector<32x64xbf16>, vector<16x64xf32> -> vector<16x64xf32>
    %154 = vector.extract_strided_slice %144 {offsets = [0, 32], sizes = [1, 64], strides = [1, 1]} : vector<1x96xf32> to vector<1x64xf32>
    %155 = vector.broadcast %154 : vector<1x64xf32> to vector<16x64xf32>
    %156 = arith.addf %153, %155 : vector<16x64xf32>
    %157 = vector.extract_strided_slice %156 {offsets = [0, 0], sizes = [16, 32], strides = [1, 1]} : vector<16x64xf32> to vector<16x32xf32>
    %158 = vector.extract_strided_slice %156 {offsets = [0, 32], sizes = [16, 32], strides = [1, 1]} : vector<16x64xf32> to vector<16x32xf32>
    %159 = vector.extract_strided_slice %150 {offsets = [0, 0], sizes = [8, 8], strides = [1, 1]} : vector<8x32xf32> to vector<8x8xf32>
    %160 = arith.truncf %159 : vector<8x8xf32> to vector<8x8xbf16>
    %161 = vector.extract_strided_slice %157 {offsets = [0, 0], sizes = [16, 8], strides = [1, 1]} : vector<16x32xf32> to vector<16x8xf32>
    %162 = arith.truncf %161 : vector<16x8xf32> to vector<16x8xbf16>
    %163 = vector.extract_strided_slice %158 {offsets = [0, 0], sizes = [16, 8], strides = [1, 1]} : vector<16x32xf32> to vector<16x8xf32>
    %164 = arith.truncf %163 : vector<16x8xf32> to vector<16x8xbf16>
    "tpu.trace_start"() <{level = 10 : i32, message = "qe,ke->qk"}> : () -> ()
    %cst_60 = arith.constant dense<0.000000e+00> : vector<8x16xf32>
    %165 = tpu.matmul %160, %162, %cst_60 {dimension_numbers = #tpu.dot_dimension_numbers<[1], [1], [0], [0], [0, 0, 1, 0], [], []>} : vector<8x8xbf16>, vector<16x8xbf16>, vector<8x16xf32> -> vector<8x16xf32>
    "tpu.trace_stop"() : () -> ()
    %cst_61 = arith.constant 0.707106769 : f32
    %166 = vector.broadcast %cst_61 : f32 to vector<8x16xf32>
    %167 = arith.mulf %165, %166 : vector<8x16xf32>
    %cst_62 = arith.constant dense<0xFF800000> : vector<8xf32>
    %168 = vector.multi_reduction <maximumf>, %167, %cst_62 [1] : vector<8x16xf32> to vector<8xf32>
    %169 = vector.shape_cast %168 : vector<8xf32> to vector<8x1xf32>
    %170 = vector.broadcast %169 : vector<8x1xf32> to vector<8x16xf32>
    %171 = arith.subf %167, %170 : vector<8x16xf32>
    %172 = math.exp %171 : vector<8x16xf32>
    %cst_63 = arith.constant dense<0.000000e+00> : vector<8xf32>
    %173 = vector.multi_reduction <add>, %172, %cst_63 [1] : vector<8x16xf32> to vector<8xf32>
    %174 = vector.shape_cast %173 : vector<8xf32> to vector<8x1xf32>
    %175 = vector.broadcast %174 : vector<8x1xf32> to vector<8x16xf32>
    %176 = arith.divf %172, %175 : vector<8x16xf32>
    %c0_64 = arith.constant 0 : index
    %c0_65 = arith.constant 0 : index
    %c0_66 = arith.constant 0 : index
    %c0_67 = arith.constant 0 : index
    %177 = vector.load %arg20[%c0_64, %c0_65, %c0_66, %c0_67] : memref<1x4x8x16xf32, #tpu.memory_space<vmem>>, vector<1x1x8x16xf32>
    %178 = vector.shape_cast %177 : vector<1x1x8x16xf32> to vector<8x16xf32>
    %179 = vector.shape_cast %176 : vector<8x16xf32> to vector<1x1x8x16xf32>
    tpu.vector_store %arg20[%c0_64, %c0_65, %c0_66, %c0_67], %179 {strides = array<i32>} : memref<1x4x8x16xf32, #tpu.memory_space<vmem>>, vector<1x1x8x16xf32>,
    %180 = arith.truncf %176 : vector<8x16xf32> to vector<8x16xbf16>
    "tpu.trace_start"() <{level = 10 : i32, message = "qk,ke->qe"}> : () -> ()
    %cst_68 = arith.constant dense<0.000000e+00> : vector<8x8xf32>
    %181 = tpu.matmul %180, %164, %cst_68 {dimension_numbers = #tpu.dot_dimension_numbers<[1], [0], [0], [1], [0, 0, 1, 1], [], []>} : vector<8x16xbf16>, vector<16x8xbf16>, vector<8x8xf32> -> vector<8x8xf32>
    "tpu.trace_stop"() : () -> ()
    %182 = vector.extract_strided_slice %150 {offsets = [0, 8], sizes = [8, 8], strides = [1, 1]} : vector<8x32xf32> to vector<8x8xf32>
    %183 = arith.truncf %182 : vector<8x8xf32> to vector<8x8xbf16>
    %184 = vector.extract_strided_slice %157 {offsets = [0, 8], sizes = [16, 8], strides = [1, 1]} : vector<16x32xf32> to vector<16x8xf32>
    %185 = arith.truncf %184 : vector<16x8xf32> to vector<16x8xbf16>
    %186 = vector.extract_strided_slice %158 {offsets = [0, 8], sizes = [16, 8], strides = [1, 1]} : vector<16x32xf32> to vector<16x8xf32>
    %187 = arith.truncf %186 : vector<16x8xf32> to vector<16x8xbf16>
    "tpu.trace_start"() <{level = 10 : i32, message = "qe,ke->qk"}> : () -> ()
    %cst_69 = arith.constant dense<0.000000e+00> : vector<8x16xf32>
    %188 = tpu.matmul %183, %185, %cst_69 {dimension_numbers = #tpu.dot_dimension_numbers<[1], [1], [0], [0], [0, 0, 1, 0], [], []>} : vector<8x8xbf16>, vector<16x8xbf16>, vector<8x16xf32> -> vector<8x16xf32>
    "tpu.trace_stop"() : () -> ()
    %cst_70 = arith.constant 0.707106769 : f32
    %189 = vector.broadcast %cst_70 : f32 to vector<8x16xf32>
    %190 = arith.mulf %188, %189 : vector<8x16xf32>
    %cst_71 = arith.constant dense<0xFF800000> : vector<8xf32>
    %191 = vector.multi_reduction <maximumf>, %190, %cst_71 [1] : vector<8x16xf32> to vector<8xf32>
    %192 = vector.shape_cast %191 : vector<8xf32> to vector<8x1xf32>
    %193 = vector.broadcast %192 : vector<8x1xf32> to vector<8x16xf32>
    %194 = arith.subf %190, %193 : vector<8x16xf32>
    %195 = math.exp %194 : vector<8x16xf32>
    %cst_72 = arith.constant dense<0.000000e+00> : vector<8xf32>
    %196 = vector.multi_reduction <add>, %195, %cst_72 [1] : vector<8x16xf32> to vector<8xf32>
    %197 = vector.shape_cast %196 : vector<8xf32> to vector<8x1xf32>
    %198 = vector.broadcast %197 : vector<8x1xf32> to vector<8x16xf32>
    %199 = arith.divf %195, %198 : vector<8x16xf32>
    %c0_73 = arith.constant 0 : index
    %c1_74 = arith.constant 1 : index
    %c0_75 = arith.constant 0 : index
    %c0_76 = arith.constant 0 : index
    %200 = vector.load %arg20[%c0_73, %c1_74, %c0_75, %c0_76] : memref<1x4x8x16xf32, #tpu.memory_space<vmem>>, vector<1x1x8x16xf32>
    %201 = vector.shape_cast %200 : vector<1x1x8x16xf32> to vector<8x16xf32>
    %202 = vector.shape_cast %199 : vector<8x16xf32> to vector<1x1x8x16xf32>
    tpu.vector_store %arg20[%c0_73, %c1_74, %c0_75, %c0_76], %202 {strides = array<i32>} : memref<1x4x8x16xf32, #tpu.memory_space<vmem>>, vector<1x1x8x16xf32>,
    %203 = arith.truncf %199 : vector<8x16xf32> to vector<8x16xbf16>
    "tpu.trace_start"() <{level = 10 : i32, message = "qk,ke->qe"}> : () -> ()
    %cst_77 = arith.constant dense<0.000000e+00> : vector<8x8xf32>
    %204 = tpu.matmul %203, %187, %cst_77 {dimension_numbers = #tpu.dot_dimension_numbers<[1], [0], [0], [1], [0, 0, 1, 1], [], []>} : vector<8x16xbf16>, vector<16x8xbf16>, vector<8x8xf32> -> vector<8x8xf32>
    "tpu.trace_stop"() : () -> ()
    %205 = vector.extract_strided_slice %150 {offsets = [0, 16], sizes = [8, 8], strides = [1, 1]} : vector<8x32xf32> to vector<8x8xf32>
    %206 = arith.truncf %205 : vector<8x8xf32> to vector<8x8xbf16>
    %207 = vector.extract_strided_slice %157 {offsets = [0, 16], sizes = [16, 8], strides = [1, 1]} : vector<16x32xf32> to vector<16x8xf32>
    %208 = arith.truncf %207 : vector<16x8xf32> to vector<16x8xbf16>
    %209 = vector.extract_strided_slice %158 {offsets = [0, 16], sizes = [16, 8], strides = [1, 1]} : vector<16x32xf32> to vector<16x8xf32>
    %210 = arith.truncf %209 : vector<16x8xf32> to vector<16x8xbf16>
    "tpu.trace_start"() <{level = 10 : i32, message = "qe,ke->qk"}> : () -> ()
    %cst_78 = arith.constant dense<0.000000e+00> : vector<8x16xf32>
    %211 = tpu.matmul %206, %208, %cst_78 {dimension_numbers = #tpu.dot_dimension_numbers<[1], [1], [0], [0], [0, 0, 1, 0], [], []>} : vector<8x8xbf16>, vector<16x8xbf16>, vector<8x16xf32> -> vector<8x16xf32>
    "tpu.trace_stop"() : () -> ()
    %cst_79 = arith.constant 0.707106769 : f32
    %212 = vector.broadcast %cst_79 : f32 to vector<8x16xf32>
    %213 = arith.mulf %211, %212 : vector<8x16xf32>
    %cst_80 = arith.constant dense<0xFF800000> : vector<8xf32>
    %214 = vector.multi_reduction <maximumf>, %213, %cst_80 [1] : vector<8x16xf32> to vector<8xf32>
    %215 = vector.shape_cast %214 : vector<8xf32> to vector<8x1xf32>
    %216 = vector.broadcast %215 : vector<8x1xf32> to vector<8x16xf32>
    %217 = arith.subf %213, %216 : vector<8x16xf32>
    %218 = math.exp %217 : vector<8x16xf32>
    %cst_81 = arith.constant dense<0.000000e+00> : vector<8xf32>
    %219 = vector.multi_reduction <add>, %218, %cst_81 [1] : vector<8x16xf32> to vector<8xf32>
    %220 = vector.shape_cast %219 : vector<8xf32> to vector<8x1xf32>
    %221 = vector.broadcast %220 : vector<8x1xf32> to vector<8x16xf32>
    %222 = arith.divf %218, %221 : vector<8x16xf32>
    %c0_82 = arith.constant 0 : index
    %c2_83 = arith.constant 2 : index
    %c0_84 = arith.constant 0 : index
    %c0_85 = arith.constant 0 : index
    %223 = vector.load %arg20[%c0_82, %c2_83, %c0_84, %c0_85] : memref<1x4x8x16xf32, #tpu.memory_space<vmem>>, vector<1x1x8x16xf32>
    %224 = vector.shape_cast %223 : vector<1x1x8x16xf32> to vector<8x16xf32>
    %225 = vector.shape_cast %222 : vector<8x16xf32> to vector<1x1x8x16xf32>
    tpu.vector_store %arg20[%c0_82, %c2_83, %c0_84, %c0_85], %225 {strides = array<i32>} : memref<1x4x8x16xf32, #tpu.memory_space<vmem>>, vector<1x1x8x16xf32>,
    %226 = arith.truncf %222 : vector<8x16xf32> to vector<8x16xbf16>
    "tpu.trace_start"() <{level = 10 : i32, message = "qk,ke->qe"}> : () -> ()
    %cst_86 = arith.constant dense<0.000000e+00> : vector<8x8xf32>
    %227 = tpu.matmul %226, %210, %cst_86 {dimension_numbers = #tpu.dot_dimension_numbers<[1], [0], [0], [1], [0, 0, 1, 1], [], []>} : vector<8x16xbf16>, vector<16x8xbf16>, vector<8x8xf32> -> vector<8x8xf32>
    "tpu.trace_stop"() : () -> ()
    %228 = vector.extract_strided_slice %150 {offsets = [0, 24], sizes = [8, 8], strides = [1, 1]} : vector<8x32xf32> to vector<8x8xf32>
    %229 = arith.truncf %228 : vector<8x8xf32> to vector<8x8xbf16>
    %230 = vector.extract_strided_slice %157 {offsets = [0, 24], sizes = [16, 8], strides = [1, 1]} : vector<16x32xf32> to vector<16x8xf32>
    %231 = arith.truncf %230 : vector<16x8xf32> to vector<16x8xbf16>
    %232 = vector.extract_strided_slice %158 {offsets = [0, 24], sizes = [16, 8], strides = [1, 1]} : vector<16x32xf32> to vector<16x8xf32>
    %233 = arith.truncf %232 : vector<16x8xf32> to vector<16x8xbf16>
    "tpu.trace_start"() <{level = 10 : i32, message = "qe,ke->qk"}> : () -> ()
    %cst_87 = arith.constant dense<0.000000e+00> : vector<8x16xf32>
    %234 = tpu.matmul %229, %231, %cst_87 {dimension_numbers = #tpu.dot_dimension_numbers<[1], [1], [0], [0], [0, 0, 1, 0], [], []>} : vector<8x8xbf16>, vector<16x8xbf16>, vector<8x16xf32> -> vector<8x16xf32>
    "tpu.trace_stop"() : () -> ()
    %cst_88 = arith.constant 0.707106769 : f32
    %235 = vector.broadcast %cst_88 : f32 to vector<8x16xf32>
    %236 = arith.mulf %234, %235 : vector<8x16xf32>
    %cst_89 = arith.constant dense<0xFF800000> : vector<8xf32>
    %237 = vector.multi_reduction <maximumf>, %236, %cst_89 [1] : vector<8x16xf32> to vector<8xf32>
    %238 = vector.shape_cast %237 : vector<8xf32> to vector<8x1xf32>
    %239 = vector.broadcast %238 : vector<8x1xf32> to vector<8x16xf32>
    %240 = arith.subf %236, %239 : vector<8x16xf32>
    %241 = math.exp %240 : vector<8x16xf32>
    %cst_90 = arith.constant dense<0.000000e+00> : vector<8xf32>
    %242 = vector.multi_reduction <add>, %241, %cst_90 [1] : vector<8x16xf32> to vector<8xf32>
    %243 = vector.shape_cast %242 : vector<8xf32> to vector<8x1xf32>
    %244 = vector.broadcast %243 : vector<8x1xf32> to vector<8x16xf32>
    %245 = arith.divf %241, %244 : vector<8x16xf32>
    %c0_91 = arith.constant 0 : index
    %c3_92 = arith.constant 3 : index
    %c0_93 = arith.constant 0 : index
    %c0_94 = arith.constant 0 : index
    %246 = vector.load %arg20[%c0_91, %c3_92, %c0_93, %c0_94] : memref<1x4x8x16xf32, #tpu.memory_space<vmem>>, vector<1x1x8x16xf32>
    %247 = vector.shape_cast %246 : vector<1x1x8x16xf32> to vector<8x16xf32>
    %248 = vector.shape_cast %245 : vector<8x16xf32> to vector<1x1x8x16xf32>
    tpu.vector_store %arg20[%c0_91, %c3_92, %c0_93, %c0_94], %248 {strides = array<i32>} : memref<1x4x8x16xf32, #tpu.memory_space<vmem>>, vector<1x1x8x16xf32>,
    %249 = arith.truncf %245 : vector<8x16xf32> to vector<8x16xbf16>
    "tpu.trace_start"() <{level = 10 : i32, message = "qk,ke->qe"}> : () -> ()
    %cst_95 = arith.constant dense<0.000000e+00> : vector<8x8xf32>
    %250 = tpu.matmul %249, %233, %cst_95 {dimension_numbers = #tpu.dot_dimension_numbers<[1], [0], [0], [1], [0, 0, 1, 1], [], []>} : vector<8x16xbf16>, vector<16x8xbf16>, vector<8x8xf32> -> vector<8x8xf32>
    "tpu.trace_stop"() : () -> ()
    %251 = tpu.concatenate %181, %204, %227, %250 in 1 : vector<8x8xf32>, vector<8x8xf32>, vector<8x8xf32>, vector<8x8xf32> -> vector<8x32xf32>
    %252 = arith.truncf %251 : vector<8x32xf32> to vector<8x32xbf16>
    %c0_96 = arith.constant 0 : index
    %c0_97 = arith.constant 0 : index
    %253 = vector.load %arg10[%c0_96, %c0_97] : memref<32x32xf32, #tpu.memory_space<vmem>>, vector<32x32xf32>
    %254 = arith.truncf %253 : vector<32x32xf32> to vector<32x32xbf16>
    %cst_98 = arith.constant dense<0.000000e+00> : vector<8x32xf32>
    %255 = tpu.matmul %252, %254, %cst_98 {dimension_numbers = #tpu.dot_dimension_numbers<[1], [0], [0], [1], [0, 0, 1, 1], [], []>} : vector<8x32xbf16>, vector<32x32xbf16>, vector<8x32xf32> -> vector<8x32xf32>
    %c0_99 = arith.constant 0 : index
    %c0_100 = arith.constant 0 : index
    %256 = vector.load %arg11[%c0_99, %c0_100] : memref<1x32xf32, #tpu.memory_space<vmem>>, vector<1x32xf32>
    %257 = vector.broadcast %256 : vector<1x32xf32> to vector<8x32xf32>
    %258 = arith.addf %255, %257 : vector<8x32xf32>
    %c0_101 = arith.constant 0 : index
    %c0_102 = arith.constant 0 : index
    %259 = vector.load %arg12[%c0_101, %c0_102] : memref<2x32xf32, #tpu.memory_space<vmem>>, vector<2x32xf32>
    %260 = arith.addf %141, %258 : vector<8x32xf32>
    %261 = vector.extract_strided_slice %259 {offsets = [0, 0], sizes = [1, 32], strides = [1, 1]} : vector<2x32xf32> to vector<1x32xf32>
    %262 = vector.shape_cast %261 : vector<1x32xf32> to vector<32xf32>
    %263 = vector.extract_strided_slice %259 {offsets = [1, 0], sizes = [1, 32], strides = [1, 1]} : vector<2x32xf32> to vector<1x32xf32>
    %264 = vector.shape_cast %263 : vector<1x32xf32> to vector<32xf32>
    %cst_103 = arith.constant dense<0.000000e+00> : vector<8xf32>
    %265 = vector.multi_reduction <add>, %260, %cst_103 [1] : vector<8x32xf32> to vector<8xf32>
    %266 = vector.shape_cast %265 : vector<8xf32> to vector<8x1xf32>
    %cst_104 = arith.constant 3.200000e+01 : f32
    %267 = vector.broadcast %cst_104 : f32 to vector<8x1xf32>
    %268 = arith.divf %266, %267 : vector<8x1xf32>
    %269 = vector.broadcast %268 : vector<8x1xf32> to vector<8x32xf32>
    %270 = arith.subf %260, %269 : vector<8x32xf32>
    %271 = arith.mulf %270, %270 : vector<8x32xf32>
    %cst_105 = arith.constant dense<0.000000e+00> : vector<8xf32>
    %272 = vector.multi_reduction <add>, %271, %cst_105 [1] : vector<8x32xf32> to vector<8xf32>
    %273 = vector.shape_cast %272 : vector<8xf32> to vector<8x1xf32>
    %cst_106 = arith.constant 3.200000e+01 : f32
    %274 = vector.broadcast %cst_106 : f32 to vector<8x1xf32>
    %275 = arith.divf %273, %274 : vector<8x1xf32>
    %cst_107 = arith.constant 9.99999974E-6 : f32
    %276 = vector.broadcast %cst_107 : f32 to vector<8x1xf32>
    %277 = arith.addf %275, %276 : vector<8x1xf32>
    %278 = math.rsqrt %277 : vector<8x1xf32>
    %279 = vector.broadcast %278 : vector<8x1xf32> to vector<8x32xf32>
    %280 = arith.mulf %270, %279 : vector<8x32xf32>
    %281 = vector.shape_cast %262 : vector<32xf32> to vector<1x32xf32>
    %282 = vector.broadcast %281 : vector<1x32xf32> to vector<8x32xf32>
    %283 = arith.mulf %280, %282 : vector<8x32xf32>
    %284 = vector.shape_cast %264 : vector<32xf32> to vector<1x32xf32>
    %285 = vector.broadcast %284 : vector<1x32xf32> to vector<8x32xf32>
    %286 = arith.addf %283, %285 : vector<8x32xf32>
    %287 = arith.truncf %286 : vector<8x32xf32> to vector<8x32xbf16>
    %c0_108 = arith.constant 0 : index
    %c0_109 = arith.constant 0 : index
    %288 = vector.load %arg13[%c0_108, %c0_109] : memref<32x64xf32, #tpu.memory_space<vmem>>, vector<32x64xf32>
    %289 = arith.truncf %288 : vector<32x64xf32> to vector<32x64xbf16>
    %cst_110 = arith.constant dense<0.000000e+00> : vector<8x64xf32>
    %290 = tpu.matmul %287, %289, %cst_110 {dimension_numbers = #tpu.dot_dimension_numbers<[1], [0], [0], [1], [0, 0, 1, 1], [], []>} : vector<8x32xbf16>, vector<32x64xbf16>, vector<8x64xf32> -> vector<8x64xf32>
    %c0_111 = arith.constant 0 : index
    %c0_112 = arith.constant 0 : index
    %291 = vector.load %arg14[%c0_111, %c0_112] : memref<1x64xf32, #tpu.memory_space<vmem>>, vector<1x64xf32>
    %292 = vector.broadcast %291 : vector<1x64xf32> to vector<8x64xf32>
    %293 = arith.addf %290, %292 : vector<8x64xf32>
    %cst_113 = arith.constant 0.000000e+00 : f32
    %294 = vector.broadcast %cst_113 : f32 to vector<8x64xf32>
    %295 = arith.maximumf %293, %294 : vector<8x64xf32>
    %296 = arith.truncf %295 : vector<8x64xf32> to vector<8x64xbf16>
    %c0_114 = arith.constant 0 : index
    %c0_115 = arith.constant 0 : index
    %297 = vector.load %arg15[%c0_114, %c0_115] : memref<64x32xf32, #tpu.memory_space<vmem>>, vector<64x32xf32>
    %298 = arith.truncf %297 : vector<64x32xf32> to vector<64x32xbf16>
    %cst_116 = arith.constant dense<0.000000e+00> : vector<8x32xf32>
    %299 = tpu.matmul %296, %298, %cst_116 {dimension_numbers = #tpu.dot_dimension_numbers<[1], [0], [0], [1], [0, 0, 1, 1], [], []>} : vector<8x64xbf16>, vector<64x32xbf16>, vector<8x32xf32> -> vector<8x32xf32>
    %c0_117 = arith.constant 0 : index
    %c0_118 = arith.constant 0 : index
    %300 = vector.load %arg16[%c0_117, %c0_118] : memref<1x32xf32, #tpu.memory_space<vmem>>, vector<1x32xf32>
    %301 = vector.broadcast %300 : vector<1x32xf32> to vector<8x32xf32>
    %302 = arith.addf %299, %301 : vector<8x32xf32>
    %c0_119 = arith.constant 0 : index
    %c0_120 = arith.constant 0 : index
    %303 = vector.load %arg17[%c0_119, %c0_120] : memref<2x32xf32, #tpu.memory_space<vmem>>, vector<2x32xf32>
    %304 = arith.addf %286, %302 : vector<8x32xf32>
    %305 = vector.extract_strided_slice %303 {offsets = [0, 0], sizes = [1, 32], strides = [1, 1]} : vector<2x32xf32> to vector<1x32xf32>
    %306 = vector.shape_cast %305 : vector<1x32xf32> to vector<32xf32>
    %307 = vector.extract_strided_slice %303 {offsets = [1, 0], sizes = [1, 32], strides = [1, 1]} : vector<2x32xf32> to vector<1x32xf32>
    %308 = vector.shape_cast %307 : vector<1x32xf32> to vector<32xf32>
    %cst_121 = arith.constant dense<0.000000e+00> : vector<8xf32>
    %309 = vector.multi_reduction <add>, %304, %cst_121 [1] : vector<8x32xf32> to vector<8xf32>
    %310 = vector.shape_cast %309 : vector<8xf32> to vector<8x1xf32>
    %cst_122 = arith.constant 3.200000e+01 : f32
    %311 = vector.broadcast %cst_122 : f32 to vector<8x1xf32>
    %312 = arith.divf %310, %311 : vector<8x1xf32>
    %313 = vector.broadcast %312 : vector<8x1xf32> to vector<8x32xf32>
    %314 = arith.subf %304, %313 : vector<8x32xf32>
    %315 = arith.mulf %314, %314 : vector<8x32xf32>
    %cst_123 = arith.constant dense<0.000000e+00> : vector<8xf32>
    %316 = vector.multi_reduction <add>, %315, %cst_123 [1] : vector<8x32xf32> to vector<8xf32>
    %317 = vector.shape_cast %316 : vector<8xf32> to vector<8x1xf32>
    %cst_124 = arith.constant 3.200000e+01 : f32
    %318 = vector.broadcast %cst_124 : f32 to vector<8x1xf32>
    %319 = arith.divf %317, %318 : vector<8x1xf32>
    %cst_125 = arith.constant 9.99999974E-6 : f32
    %320 = vector.broadcast %cst_125 : f32 to vector<8x1xf32>
    %321 = arith.addf %319, %320 : vector<8x1xf32>
    %322 = math.rsqrt %321 : vector<8x1xf32>
    %323 = vector.broadcast %322 : vector<8x1xf32> to vector<8x32xf32>
    %324 = arith.mulf %314, %323 : vector<8x32xf32>
    %325 = vector.shape_cast %306 : vector<32xf32> to vector<1x32xf32>
    %326 = vector.broadcast %325 : vector<1x32xf32> to vector<8x32xf32>
    %327 = arith.mulf %324, %326 : vector<8x32xf32>
    %328 = vector.shape_cast %308 : vector<32xf32> to vector<1x32xf32>
    %329 = vector.broadcast %328 : vector<1x32xf32> to vector<8x32xf32>
    %330 = arith.addf %327, %329 : vector<8x32xf32>
    %c0_126 = arith.constant 0 : index
    %c0_127 = arith.constant 0 : index
    %c0_128 = arith.constant 0 : index
    %331 = vector.load %arg18[%c0_126, %c0_127, %c0_128] : memref<1x8x32xf32, #tpu.memory_space<vmem>>, vector<1x8x32xf32>
    %332 = vector.shape_cast %331 : vector<1x8x32xf32> to vector<8x32xf32>
    %333 = vector.shape_cast %330 : vector<8x32xf32> to vector<1x8x32xf32>
    tpu.vector_store %arg18[%c0_126, %c0_127, %c0_128], %333 {strides = array<i32>} : memref<1x8x32xf32, #tpu.memory_space<vmem>>, vector<1x8x32xf32>,
    return
  }
  func.func @transform_0(%arg0: i32) -> (i32, i32, i32) {
    %c0_i32 = arith.constant 0 : i32
    %c0_i32_0 = arith.constant 0 : i32
    %c0_i32_1 = arith.constant 0 : i32
    return %arg0, %c0_i32, %c0_i32_0 : i32, i32, i32
  }
  func.func @transform_1(%arg0: i32) -> (i32, i32, i32) {
    %c0_i32 = arith.constant 0 : i32
    %c0_i32_0 = arith.constant 0 : i32
    %c0_i32_1 = arith.constant 0 : i32
    return %arg0, %c0_i32, %c0_i32_0 : i32, i32, i32
  }
  func.func @transform_2(%arg0: i32) -> (i32, i32) {
    %c0_i32 = arith.constant 0 : i32
    %c0_i32_0 = arith.constant 0 : i32
    %c0_i32_1 = arith.constant 0 : i32
    return %c0_i32, %c0_i32_0 : i32, i32
  }
  func.func @transform_3(%arg0: i32) -> (i32, i32) {
    %c0_i32 = arith.constant 0 : i32
    %c0_i32_0 = arith.constant 0 : i32
    %c0_i32_1 = arith.constant 0 : i32
    return %c0_i32, %c0_i32_0 : i32, i32
  }
  func.func @transform_4(%arg0: i32) -> (i32, i32) {
    %c0_i32 = arith.constant 0 : i32
    %c0_i32_0 = arith.constant 0 : i32
    %c0_i32_1 = arith.constant 0 : i32
    return %c0_i32, %c0_i32_0 : i32, i32
  }
  func.func @transform_5(%arg0: i32) -> (i32, i32) {
    %c0_i32 = arith.constant 0 : i32
    %c0_i32_0 = arith.constant 0 : i32
    %c0_i32_1 = arith.constant 0 : i32
    return %c0_i32, %c0_i32_0 : i32, i32
  }
  func.func @transform_6(%arg0: i32) -> (i32, i32) {
    %c0_i32 = arith.constant 0 : i32
    %c0_i32_0 = arith.constant 0 : i32
    %c0_i32_1 = arith.constant 0 : i32
    return %c0_i32, %c0_i32_0 : i32, i32
  }
  func.func @transform_7(%arg0: i32) -> (i32, i32) {
    %c0_i32 = arith.constant 0 : i32
    %c0_i32_0 = arith.constant 0 : i32
    %c0_i32_1 = arith.constant 0 : i32
    return %c0_i32, %c0_i32_0 : i32, i32
  }
  func.func @transform_8(%arg0: i32) -> (i32, i32) {
    %c0_i32 = arith.constant 0 : i32
    %c0_i32_0 = arith.constant 0 : i32
    %c0_i32_1 = arith.constant 0 : i32
    return %c0_i32, %c0_i32_0 : i32, i32
  }
  func.func @transform_9(%arg0: i32) -> (i32, i32) {
    %c0_i32 = arith.constant 0 : i32
    %c0_i32_0 = arith.constant 0 : i32
    %c0_i32_1 = arith.constant 0 : i32
    return %c0_i32, %c0_i32_0 : i32, i32
  }
  func.func @transform_10(%arg0: i32) -> (i32, i32) {
    %c0_i32 = arith.constant 0 : i32
    %c0_i32_0 = arith.constant 0 : i32
    %c0_i32_1 = arith.constant 0 : i32
    return %c0_i32, %c0_i32_0 : i32, i32
  }
  func.func @transform_11(%arg0: i32) -> (i32, i32) {
    %c0_i32 = arith.constant 0 : i32
    %c0_i32_0 = arith.constant 0 : i32
    %c0_i32_1 = arith.constant 0 : i32
    return %c0_i32, %c0_i32_0 : i32, i32
  }
  func.func @transform_12(%arg0: i32) -> (i32, i32) {
    %c0_i32 = arith.constant 0 : i32
    %c0_i32_0 = arith.constant 0 : i32
    %c0_i32_1 = arith.constant 0 : i32
    return %c0_i32, %c0_i32_0 : i32, i32
  }
  func.func @transform_13(%arg0: i32) -> (i32, i32) {
    %c0_i32 = arith.constant 0 : i32
    %c0_i32_0 = arith.constant 0 : i32
    %c0_i32_1 = arith.constant 0 : i32
    return %c0_i32, %c0_i32_0 : i32, i32
  }
  func.func @transform_14(%arg0: i32) -> (i32, i32) {
    %c0_i32 = arith.constant 0 : i32
    %c0_i32_0 = arith.constant 0 : i32
    %c0_i32_1 = arith.constant 0 : i32
    return %c0_i32, %c0_i32_0 : i32, i32
  }
  func.func @transform_15(%arg0: i32) -> (i32, i32) {
    %c0_i32 = arith.constant 0 : i32
    %c0_i32_0 = arith.constant 0 : i32
    %c0_i32_1 = arith.constant 0 : i32
    return %c0_i32, %c0_i32_0 : i32, i32
  }
  func.func @transform_16(%arg0: i32) -> (i32, i32) {
    %c0_i32 = arith.constant 0 : i32
    %c0_i32_0 = arith.constant 0 : i32
    %c0_i32_1 = arith.constant 0 : i32
    return %c0_i32, %c0_i32_0 : i32, i32
  }
  func.func @transform_17(%arg0: i32) -> (i32, i32, i32) {
    %c0_i32 = arith.constant 0 : i32
    %c0_i32_0 = arith.constant 0 : i32
    %c0_i32_1 = arith.constant 0 : i32
    return %arg0, %c0_i32, %c0_i32_0 : i32, i32, i32
  }
  func.func @transform_18(%arg0: i32) -> (i32, i32, i32, i32) {
    %c0_i32 = arith.constant 0 : i32
    %c0_i32_0 = arith.constant 0 : i32
    %c0_i32_1 = arith.constant 0 : i32
    %c0_i32_2 = arith.constant 0 : i32
    return %arg0, %c0_i32, %c0_i32_0, %c0_i32_1 : i32, i32, i32, i32
  }
  func.func @transform_19(%arg0: i32) -> (i32, i32, i32, i32) {
    %c0_i32 = arith.constant 0 : i32
    %c0_i32_0 = arith.constant 0 : i32
    %c0_i32_1 = arith.constant 0 : i32
    %c0_i32_2 = arith.constant 0 : i32
    return %arg0, %c0_i32, %c0_i32_0, %c0_i32_1 : i32, i32, i32, i32
  }
}

</mosaic_0001>

<bundles_post_ra>
// kernel: tpu_custom_call.1
= control target key start
LH: loop header
LB: loop body
LE: loop exit
PB: predicated region body
PF: predicated region fallthrough
CT: control target
= control target key end

     0   :  { %s3699_s0 = inlined_call_operand.hbm [shape: f32[2,8,32], index: 0, kind: input, shape index: {}]   ;;  %s3700_s1 = inlined_call_operand.vmem [shape: f32[2,16,32], index: 1, kind: input, shape index: {}]   ;;  %s3701_s2 = inlined_call_operand.vmem [shape: f32[32,96], index: 2, kind: input, shape index: {}]   ;;  %s3702_s3 = inlined_call_operand.vmem [shape: f32[1,96], index: 3, kind: input, shape index: {}]   ;;  %s3703_s4 = inlined_call_operand.vmem [shape: f32[32,32], index: 4, kind: input, shape index: {}]   ;;  %s3704_s5 = inlined_call_operand.vmem [shape: f32[1,32], index: 5, kind: input, shape index: {}]   ;;  %s3705_s6 = inlined_call_operand.vmem [shape: f32[2,32], index: 6, kind: input, shape index: {}]   ;;  %s3706_s7 = inlined_call_operand.hbm [shape: f32[32,96], index: 7, kind: input, shape index: {}]   ;;  %s3707_s8 = inlined_call_operand.vmem [shape: f32[1,96], index: 8, kind: input, shape index: {}]   ;;  %s3708_s9 = inlined_call_operand.hbm [shape: f32[32,32], index: 9, kind: input, shape index: {}]   ;;  %s3709_s10 = inlined_call_operand.vmem [shape: f32[1,32], index: 10, kind: input, shape index: {}]   ;;  %s3710_s11 = inlined_call_operand.vmem [shape: f32[2,32], index: 11, kind: input, shape index: {}]   ;;  %s3711_s12 = inlined_call_operand.hbm [shape: f32[32,64], index: 12, kind: input, shape index: {}]   ;;  %s3712_s13 = inlined_call_operand.vmem [shape: f32[1,64], index: 13, kind: input, shape index: {}]   ;;  %s3713_s14 = inlined_call_operand.vmem [shape: f32[64,32], index: 14, kind: input, shape index: {}]   ;;  %s3714_s15 = inlined_call_operand.vmem [shape: f32[1,32], index: 15, kind: input, shape index: {}]   ;;  %s3715_s16 = inlined_call_operand.vmem [shape: f32[2,32], index: 16, kind: input, shape index: {}]   ;;  %s3716_s17 = inlined_call_operand.hbm [shape: f32[2,8,32], index: 17, kind: output, shape index: {0}]   ;;  %s3717_s18 = inlined_call_operand.hbm [shape: f32[2,4,8,8], index: 18, kind: output, shape index: {1}]   ;;  %s3718_s19 = inlined_call_operand.hbm [shape: f32[2,4,8,16], index: 19, kind: output, shape index: {2}]  }
   0x1   :  { %3744 = sst [smem:[#allocation25_spill]] %s3699_s0 }
   0x2   :  { %3745 = sst [smem:[#allocation26_spill]] %s3700_s1 }
   0x3   :  { %3746 = sst [smem:[#allocation27_spill]] %s3701_s2 }
   0x4   :  { %3747 = sst [smem:[#allocation28_spill]] %s3702_s3 }
   0x5   :  { %3748 = sst [smem:[#allocation29_spill]] %s3706_s7 }
   0x6   :  { %3749 = sst [smem:[#allocation30_spill]] %s3708_s9 }
   0x7   :  { %3750 = sst [smem:[#allocation31_spill]] %s3711_s12 }
   0x8   :  { %3751 = sst [smem:[#allocation32_spill]] %s3715_s16 }
   0x9   :  { %3752 = sst [smem:[#allocation33_spill]] %s3716_s17 }
   0xa   :  { %25 = vsyncpa [#allocation3], 0 }
   0xb   :  { %27 = vsyncpa [#allocation3 + $0x1], 0 }
   0xc   :  { %28 = vsyncpa [#allocation6], 0 }
   0xd   :  { %29 = vsyncpa [#allocation9], 0 }
   0xe   :  { %30 = vsyncpa [#allocation4], 0 }
   0xf   :  { %32 = vsyncpa [#allocation4 + $0x1], 0 }
  0x10   :  { %33 = vsyncpa [#allocation12], 0 }
  0x11   :  { %35 = vsyncpa [#allocation12 + $0x1], 0  ;;  %s3127_s0 = smov 0   ;;  %s3129_s30 = smov 0  }
  0x12   :  { %s3131_s20 = smov 0   ;;  %s3133_s21 = smov 0  }
  0x13 LB: > { %3753 = sst [smem:[#allocation19_spill]] %s2987_s0  ;;  %s3148_s1 = sadd.s32 4294967295, %s2999_s21   ;;  %s2999_s21 = sphi %s3133_s21, %s3796_s21   ;;  %s2995_s20 = sphi %s3131_s20, %s3798_s20   ;;  %s2991_s30 = sphi %s3129_s30, %s3800_s30   ;;  %s2987_s0 = sphi %s3127_s0, %s3799_s0  }
  0x14   : > { %3754 = sst [smem:[#allocation20_spill]] %s2995_s20  ;;  %s3721_s22 = sadd.s32 4294967294, %s2999_s21  }
  0x15   : > { %3755 = sst [smem:[#allocation21_spill]] %s2999_s21  ;;  %p61_p0 = scmp.ne.s32.totalorder %s2991_s30, %s2987_s0 }
  0x16   : > { %p3725_p1 = scmp.eq.s32.totalorder %s3148_s1, 0  ;;  %p432_p3 = scmp.eq.s32.totalorder %s3721_s22, 1 }
  0x17   : > { %p2345_p5 = scmp.ge.s32.totalorder %s2999_s21, 1  ;;  %p491_p7 = scmp.lt.s32.totalorder %s2999_s21, 3 }
  0x18   : > { %p3159_p4 = por %p3725_p1, %p61_p0  ;;  %p3164_p6 = por %p432_p3, %p61_p0 }
  0x19   : > { %p3169_p8 = pnand %p2345_p5, %p491_p7  ;;  %s3001_s25 = smov [#allocation5]  }
  0x1a   : > { %s3756_s2 = scalar_select %p3159_p4, 1, 0 }
  0x1b   : > { %s3757_s23 = scalar_select %p3164_p6, 1, 0 }
  0x1c   : > { %s3759_s24 = scalar_select %p3169_p8, 1, 0 }
  0x1d   : > { %3758 = sst [smem:[#allocation22_spill]] %s3757_s23  ;;  %s518_s3 = sshll.u32 %s3001_s25, 4  ;;  %s519_s3 = int_to_ptr.vmem [resolvable:$true] %s518_s3 }
  0x1e   : > { %p2641_p9 = pneg %p3169_p8  ;;  %s3002_s27 = smov [#allocation7]  }
  0x1f   : > { %s534_s28 = sshll.u32 %s3002_s27, 4  ;;  %s3003_s29 = smov [#allocation8]   ;;  %s535_s28 = int_to_ptr.vmem [resolvable:$true] %s534_s28 }
  0x20   : > { %p3178_p11 = pnand %p2641_p9, %p3725_p1  ;;  %s553_s22 = sshll.u32 %s3003_s29, 4  ;;  %s554_s22 = int_to_ptr.vmem [resolvable:$true] %s553_s22 }
  0x21   : > { %s2776_s23 = scalar_lea.vmem %s519_s3, 512  ;;  %p2784_p5 = scmp.lt.s32.totalorder %s519_s3, %s519_s3 }
  0x22   : > { %p2767_p12 = pneg %p3178_p11  ;;  %p2777_p13 = scmp.ne.s32.totalorder %s519_s3, %s2776_s23 }
  0x23   : > { %p2785_p7 = scmp.lt.s32.totalorder %s2776_s23, %s2776_s23 }
  0x24   : > { %p2779_p0 = pnand %p2777_p13, %p2767_p12 }
  0x25   : > { %p2786_p9 = por %p2785_p7, %p2784_p5 }
  0x26   : > { %p2780_p3 = pneg %p2779_p0 }
  0x28   : > { %p2787_p10 = pnand %p2786_p9, %p2780_p3 }
  0x2a   : > { %2790 = shalt.err (!%p2787_p10)
}
  0x2b   : > { %s3004_s25 = smov 128   ;;  %s3005_s27 = smov 8  }
  0x2c   : > { %s3761_s7 = sld [smem:[#allocation29_spill]]  ;;  %s2802_s17 = scalar_lea.vmem %s535_s28, 512 }
  0x2d   : > { %p2803_p1 = scmp.ne.s32.totalorder %s535_s28, %s2802_s17  ;;  %p2810_p2 = scmp.lt.s32.totalorder %s535_s28, %s535_s28 }
  0x2e   : > { %p2811_p6 = scmp.lt.s32.totalorder %s2802_s17, %s2802_s17 }
  0x2f   : > { %p2805_p13 = pnand %p2803_p1, %p2767_p12 }
  0x30   : > { %p2812_p5 = por %p2811_p6, %p2810_p2 }
  0x31   : > { %p2806_p0 = pneg %p2805_p13 }
  0x32   : > { %2644 = dma.hbm_to_vmem [thread:$0]  (!%p3178_p11), %s3761_s7, 512, %s519_s3, [#allocation6], %s3004_s25, %s3004_s25, %s3005_s27  }
  0x33   : > { %p2813_p3 = pnand %p2812_p5, %p2806_p0 }
  0x35   : > { %2816 = shalt.err (!%p2813_p3)
}
  0x36   : > { %s3762_s9 = sld [smem:[#allocation30_spill]]  ;;  %s2828_s0 = scalar_lea.vmem %s554_s22, 512 }
  0x37   : > { %p2829_p10 = scmp.ne.s32.totalorder %s554_s22, %s2828_s0  ;;  %p2836_p9 = scmp.lt.s32.totalorder %s554_s22, %s554_s22 }
  0x38   : > { %p2837_p13 = scmp.lt.s32.totalorder %s2828_s0, %s2828_s0 }
  0x39   : > { %p2831_p7 = pnand %p2829_p10, %p2767_p12 }
  0x3a   : > { %p2838_p4 = por %p2837_p13, %p2836_p9 }
  0x3b   : > { %p2832_p1 = pneg %p2831_p7 }
  0x3c   : > { %2647 = dma.hbm_to_vmem [thread:$0]  (!%p3178_p11), %s3762_s9, 512, %s535_s28, [#allocation6], %s3004_s25, %s3004_s25, %s3005_s27  }
  0x3d   : > { %p2839_p2 = pnand %p2838_p4, %p2832_p1 }
  0x3f   : > { %2842 = shalt.err (!%p2839_p2)
}
  0x40   : > { %s3763_s12 = sld [smem:[#allocation31_spill]]  ;;  %s3209_s16 = sadd.s32 1, %s2999_s21  }
  0x41   : > { %3764 = sst [smem:[#allocation23_spill]] %s3209_s16  ;;  %s45_s28 = ssub.s32 %s2999_s21, %s3209_s16 }
  0x42   : > { %s48_s26 = sadd.s32 1, %s2995_s20  ;;  %p46_p4 = scmp.eq.s32.totalorder %s45_s28, 0 }
  0x43   : > { %p55_p6 = scmp.ne.s32.totalorder %s2995_s20, %s2991_s30  ;;  %p56_p12 = scmp.eq.s32.totalorder %s2999_s21, 0 }
  0x44   : > { %p2668_p0 = scmp.lt.s32.totalorder %s2999_s21, 2  ;;  %p3766_p3 = scmp.eq.s32.totalorder %s3148_s1, 1 }
  0x45   : > { %s3219_s29 = scalar_select %p46_p4, %s2995_s20, %s48_s26  }
  0x46   : > { %2650 = dma.hbm_to_vmem [thread:$0]  (!%p3178_p11), %s3763_s12, 512, %s554_s22, [#allocation9], %s3004_s25, %s3004_s25, %s3005_s27  }
  0x47   : > { %3765 = sst [smem:[#allocation24_spill]] %s3219_s29  ;;  %p57_p5 = por %p56_p12, %p55_p6 }
  0x48   : > { %p3223_p10 = por %p3766_p3, %p55_p6  ;;  %s579_s0 = sand.u32 1, %s2995_s20  }
  0x49   : > { %s2351_s17 = sshll.u32 %s2999_s21, 7  ;;  %s2350_s22 = sshll.u32 %s579_s0, 3 }
  0x4a   : > { %s3767_s23 = scalar_select %p3223_p10, 1, 0 }
  0x4b   : > { %s3768_s3 = sld [smem:[#allocation25_spill]]  ;;  %s583_s28 = scalar_lea.vmem [#allocation2], %s2350_s22 }
  0x4c   : > { %s590_s26 = sshll.u32 %s583_s28, 4  ;;  %p3234_p11 = pnand %p2668_p0, %p57_p5  ;;  %s591_s26 = int_to_ptr.vmem [resolvable:$true] %s590_s26 }
  0x4d   : > { %s580_s12 = scalar_lea.sflag [#allocation3], %s579_s0 }
  0x4e   : > { %p2845_p1 = pneg %p3234_p11 }
  0x51   : > { %s3232_s7 = scalar_lea.hbm %s3768_s3, %s2351_s17  ;;  %s2848_s27 = scalar_lea.hbm %s3768_s3, 256 }
  0x52   : > { %s2843_s29 = scalar_lea.hbm %s3232_s7, 128  ;;  %p2849_p2 = scmp.lt.s32.totalorder %s3232_s7, %s3768_s3 }
  0x53   : > { %p2844_p7 = scmp.ne.s32.totalorder %s3232_s7, %s2843_s29  ;;  %p2850_p4 = scmp.lt.s32.totalorder %s2848_s27, %s2843_s29 }
  0x55   : > { %p2846_p9 = pnand %p2845_p1, %p2844_p7  ;;  %p2851_p6 = por %p2850_p4, %p2849_p2 }
  0x57   : > { %p2847_p13 = pneg %p2846_p9 }
  0x59   : > { %p2852_p12 = pnand %p2851_p6, %p2847_p13 }
  0x5b   : > { %2855 = shalt.err (!%p2852_p12)
}
  0x5c   : > { %s2856_s28 = scalar_lea.vmem %s591_s26, 128  ;;  %s3006_s0 = smov [#allocation2]  }
  0x5d   : > { %p2857_p0 = scmp.ne.s32.totalorder %s591_s26, %s2856_s28  ;;  %s2861_s16 = sshll.u32 %s3006_s0, 4  ;;  %s2862_s16 = int_to_ptr.vmem [resolvable:$false] %s2861_s16 }
  0x5e   : > { %s2863_s21 = scalar_lea.vmem %s2862_s16, 256  ;;  %p2864_p7 = scmp.lt.s32.totalorder %s591_s26, %s2862_s16 }
  0x5f   : > { %p2859_p5 = pnand %p2857_p0, %p2845_p1  ;;  %p2865_p9 = scmp.lt.s32.totalorder %s2863_s21, %s2856_s28 }
  0x61   : > { %p2860_p3 = pneg %p2859_p5  ;;  %p2866_p10 = por %p2865_p9, %p2864_p7 }
  0x63   : > { %p2867_p8 = pnand %p2866_p10, %p2860_p3 }
  0x65   : > { %2870 = shalt.err (!%p2867_p8)
}
  0x66   : > { %2654 = dma.hbm_to_vmem [thread:$0]  (!%p3234_p11), %s3232_s7, 128, %s591_s26, %s580_s12  }
  0x67   : > { %p3770_p13 = scmp.ne.s32.totalorder %s3759_s24, 0 }
  0x68   : > { %s3255_s20 = sand.u32 (!%p3770_p13), 1, %s2991_s30   ;;  %p3771_p10 = scmp.ne.s32.totalorder (!%p3770_p13), %s3756_s2, 0 }
  0x69   : > { %607 = sbr.rel (%p3770_p13) target bundleno = 4250 (0x109a), region = 88  ;;  %s3734_s29 = sshll.u32 (!%p3770_p13), %s3255_s20, 3 }
  0x6a   : > { %s610_s16 = scalar_lea.sflag (!%p3770_p13), [#allocation3], %s3255_s20  ;;  %s613_s21 = scalar_lea.vmem (!%p3770_p13), [#allocation2], %s3734_s29 }
  0x6e   : > { %2966 = dma.done.wait (%p3771_p10), %s610_s16, 128  }
  0x6f   : > { %2968 = vsyncadd (%p3771_p10), %s610_s16, 4294967168  ;;  %p3772_p8 = scmp.eq.s32.totalorder %s3148_s1, 0 }
  0x71   : > { %2970 = dma.done.wait (%p3772_p8), [#allocation6], 1024   ;;  %p3773_p11 = pmov %p3772_p8 }
  0x72   : > { %p3774_p1 = pmov %p3772_p8 }
  0x73   : > { %2972 = vsyncadd (%p3773_p11), [#allocation6], 4294966272 }
  0x74   : > { %2974 = dma.done.wait (%p3774_p1), [#allocation9], 512   ;;  %p3775_p2 = pmov %p3774_p1 }
  0x75   : > { %v3007_v0 = vmov 0.0   ;;  %vm3008_vm0 = vmmov 0   ;;  %s3776_s12 = sld [smem:[#allocation27_spill]]  ;;  %v3291_v7 = vld [vmem:[%s613_s21] sm:$0xff]  ;;  %vm718_vm1 = vcmask 261120   ;;  %s3009_s16 = smov 120  }
  0x76   : > { %2976 = vsyncadd (%p3775_p2), [#allocation9], 4294966784  ;;  %2465 = vmatprep.subr.bf16.mxu1 %v3007_v0  ;;  %2469 = vmatprep.mubr.msk.bf16.mxu1 %vm3008_vm0, %v3007_v0  ;;  %v711_v8 = vpack.c.bf16 %v3291_v7, %v3291_v7  ;;  %s3777_s0 = sld [smem:[#allocation28_spill]]  ;;  %s3010_s21 = smov 96   ;;  %vm766_vm2 = vcmask 64512   ;;  %vm832_vm3 = vcmask 1043456  }
  0x77   : > { %2479 = vmatprep.subr.bf16.mxu0 %v3007_v0  ;;  %2481 = vmatprep.mubr.msk.bf16.mxu0 %vm3008_vm0, %v3007_v0  ;;  %s3735_s7 = smov 80   ;;  %s3012_s9 = smov 88   ;;  %vm1228_vm4 = vcmask 130048   ;;  %vm1230_vm5 = vcmask 195584   ;;  %vm2046_vm6 = vcmask 523264  }
  0x78   : > { %s3739_s2 = smov 72   ;;  %s3014_s24 = smov 112  }
  0x79   : > { %s3015_s26 = smov 104   ;;  %s3016_s17 = smov 56  }
  0x7a   : > { %s3017_s25 = smov 64   ;;  %s3018_s27 = smov 40  }
  0x7b   : > { %v706_v1 = vld [vmem:[%s3776_s12 + $0x10] sm:$0xff]  ;;  %v707_v2 = vld [vmem:[%s3776_s12 + $0x18] sm:$0xff]  ;;  %v704_v3 = vld [vmem:[%s3776_s12] sm:$0xff]  ;;  %s3019_s22 = smov 48   ;;  %s3736_s28 = sshll.u32 %s3255_s20, 5 }
  0x7c   : > { %v709_v4 = vpack.c.bf16 %v707_v2, %v706_v1  ;;  %v705_v5 = vld [vmem:[%s3776_s12 + $0x8] sm:$0xff]  ;;  %v2362_v9 = vld [vmem:[%s3777_s0] ss:$0 sm:$0xff]  ;;  %s3355_s0 = scalar_lea.vmem [#allocation11], %s3736_s28  ;;  %s3740_s29 = smov 24  }
  0x7d   : > { %v708_v6 = vpack.c.bf16 %v705_v5, %v704_v3  ;;  %p695_p4 = scmp.lt.s32.totalorder %s3148_s1, 1  ;;  %p3785_p12 = scmp.ne.s32.totalorder %s3767_s23, 0 }
  0x7e   : > { %2466 = vmatpush3.bf16.msra.mxu1 %v709_v4 }
  0x7f   : > { %2467 = vmatprep.subr.bf16.mxu1 %v3007_v0 }
  0x82   : > { %2468 = vmatpush3.bf16.msra.mxu1 %v708_v6 }
  0x83   : > { %2473 = vmatprep.subr.bf16.mxu1 %v3007_v0 }
  0x85   : > { %2470 = vmatmul.mubr.msk.bf16.vlgmr.msra.gmra.mxu1 %vm718_vm1, %v711_v8 }
  0x86   : > { %2475 = vmatprep.mubr.msk.bf16.mxu1 %vm3008_vm0, %v3007_v0 }
 0x145   : > { %v756_v10 = vpop.f32.mrf.mxu1 }
 0x146   : > { %v757_v11 = vadd.f32 %v2362_v9, %v756_v10 }
 0x147   : > { %v2471_v12 = vpop.f32.mrf.mxu1 }
 0x148   : > { %v3303_v13 = vpack.c.bf16 %v757_v11, %v757_v11 }
 0x149   : > { %v759_v14 = vpop.f32.mrf.mxu1 }
 0x14a   : > { %876 = vrot.lane.b32.xlu1 %v3303_v13, %s3009_s16  ;;  %764 = vrot.lane.b32.xlu0 %v3303_v13, %s3010_s21 }
 0x14b   : > { %v2472_v15 = vpop.f32.mrf.mxu1 }
 0x14e   : > { %991 = vrot.lane.b32.xlu1 %v3303_v13, %s3735_s7  ;;  %878 = vrot.lane.b32.xlu0 %v3303_v13, %s3012_s9  ;;  %s2121_s7 = sand.u32 1, %s3148_s1  }
 0x152   : > { %1104 = vrot.lane.b32.xlu1 %v3303_v13, %s3739_s2  ;;  %989 = vrot.lane.b32.xlu0 %v3303_v13, %s3014_s24  ;;  %s3742_s2 = sshll.u32 %s3148_s1, 9 }
 0x156   : > { %1102 = vrot.lane.b32.xlu0 %v3303_v13, %s3015_s26 }
 0x1bc   : > { %v765_v16 = vpop.permute.xlu0 %764  ;;  %v877_v19 = vpop.permute.xlu1 %876 }
 0x1bd   : > { %v771_v17 = vsel %vm766_vm2, %v765_v16, 0 }
 0x1be   : > { %2474 = vmatpush3.bf16.xpose.msra.mxu1 %v771_v17 }
 0x1bf   : > { %2485 = vmatprep.subr.bf16.mxu1 %v3007_v0 }
 0x1c0   : > { %v879_v18 = vpop.permute.xlu0 %878  ;;  %v992_v21 = vpop.permute.xlu1 %991 }
 0x1c1   : > { %v884_v20 = vsel %vm766_vm2, %v879_v18, 0  ;;  %v997_v22 = vsel %vm766_vm2, %v992_v21, 0 }
 0x1c4   : > { %v1105_v23 = vpop.permute.xlu1 %1104  ;;  %v990_v24 = vpop.permute.xlu0 %989 }
 0x1c5   : > { %2476 = vmatmul.mubr.msk.bf16.vlgmr.msra.gmra.mxu1 %vm766_vm2, %v3303_v13  ;;  %v1110_v25 = vsel %vm766_vm2, %v1105_v23, 0 }
 0x1c6   : > { %2486 = vmatpush3.bf16.xpose.msra.mxu1 %v884_v20  ;;  %2487 = vmatprep.mubr.msk.bf16.mxu1 %vm3008_vm0, %v3007_v0 }
 0x1c7   : > { %2497 = vmatprep.subr.bf16.mxu1 %v3007_v0 }
 0x1c8   : > { %v1103_v26 = vpop.permute.xlu0 %1102 }
 0x1cd   : > { %2488 = vmatmul.mubr.msk.bf16.vlgmr.msra.gmra.mxu1 %vm766_vm2, %v877_v19 }
 0x1ce   : > { %2498 = vmatpush3.bf16.xpose.msra.mxu1 %v997_v22  ;;  %2499 = vmatprep.mubr.msk.bf16.mxu1 %vm3008_vm0, %v3007_v0 }
 0x1cf   : > { %2509 = vmatprep.subr.bf16.mxu1 %v3007_v0 }
 0x1d5   : > { %2500 = vmatmul.mubr.msk.bf16.vlgmr.msra.gmra.mxu1 %vm766_vm2, %v990_v24 }
 0x1d6   : > { %2510 = vmatpush3.bf16.xpose.msra.mxu1 %v1110_v25  ;;  %2511 = vmatprep.mubr.msk.bf16.mxu1 %vm3008_vm0, %v3007_v0 }
 0x1d7   : > { %2521 = vmatprep.subr.bf16.mxu1 %v3007_v0 }
 0x1dd   : > { %2512 = vmatmul.mubr.msk.bf16.vlgmr.msra.gmra.mxu1 %vm766_vm2, %v1103_v26 }
 0x1de   : > { %2525 = vmatprep.mubr.msk.bf16.mxu1 %vm3008_vm0, %v3007_v0 }
 0x285   : > { %v807_v27 = vpop.f32.mrf.mxu1 }
 0x286   : > { %v813_v28 = vmul.f32 0.70710677, %v807_v27 }
 0x287   : > { %v2477_v29 = vpop.f32.mrf.mxu1 }
 0x288   : > { %v814_v30 = vsel %vm766_vm2, %v813_v28, -inf }
 0x289   : > { %815 = vmax.xlane.f32.xlu1 %v814_v30  ;;  %v810_v31 = vpop.f32.mrf.mxu1 }
 0x28b   : > { %v2478_v32 = vpop.f32.mrf.mxu1 }
 0x28d   : > { %v920_v33 = vpop.f32.mrf.mxu1 }
 0x28e   : > { %v926_v34 = vmul.f32 0.70710677, %v920_v33 }
 0x28f   : > { %v2489_v35 = vpop.f32.mrf.mxu1 }
 0x290   : > { %v927_v36 = vsel %vm766_vm2, %v926_v34, -inf }
 0x291   : > { %928 = vmax.xlane.f32.xlu0 %v927_v36  ;;  %v923_v37 = vpop.f32.mrf.mxu1 }
 0x293   : > { %v2490_v38 = vpop.f32.mrf.mxu1 }
 0x295   : > { %v1033_v39 = vpop.f32.mrf.mxu1 }
 0x296   : > { %v1039_v40 = vmul.f32 0.70710677, %v1033_v39 }
 0x297   : > { %v2501_v41 = vpop.f32.mrf.mxu1 }
 0x298   : > { %v1040_v42 = vsel %vm766_vm2, %v1039_v40, -inf  ;;  %v1235_v41 = vld [vmem:[%s3703_s4 + $0x10] sm:$0xff] }
 0x299   : > { %1041 = vmax.xlane.f32.xlu0 %v1040_v42  ;;  %v1036_v43 = vpop.f32.mrf.mxu1  ;;  %v1236_v42 = vld [vmem:[%s3703_s4 + $0x18] sm:$0xff] }
 0x29a   : > { %v1238_v43 = vpack.c.bf16 %v1236_v42, %v1235_v41 }
 0x29b   : > { %v2502_v44 = vpop.f32.mrf.mxu1 }
 0x29c   : > { %2522 = vmatpush3.bf16.msra.mxu1 %v1238_v43  ;;  %v1233_v44 = vld [vmem:[%s3703_s4] sm:$0xff] }
 0x29d   : > { %v1146_v45 = vpop.f32.mrf.mxu1  ;;  %2523 = vmatprep.subr.bf16.mxu1 %v3007_v0 }
 0x29e   : > { %v1152_v46 = vmul.f32 0.70710677, %v1146_v45  ;;  %v1234_v45 = vld [vmem:[%s3703_s4 + $0x8] sm:$0xff] }
 0x29f   : > { %v2513_v47 = vpop.f32.mrf.mxu1 }
 0x2a0   : > { %v1153_v48 = vsel %vm766_vm2, %v1152_v46, -inf }
 0x2a1   : > { %1154 = vmax.xlane.f32.xlu1 %v1153_v48  ;;  %v1149_v49 = vpop.f32.mrf.mxu1 }
 0x2a3   : > { %v2514_v50 = vpop.f32.mrf.mxu1 }
 0x312   : > { %v816_v51 = vpop.xlane.xlu1 %815 }
 0x313   : > { %v817_v52 = vsub.f32 %v813_v28, %v816_v51 }
 0x315   : > { %v818_v53 = vmul.f32 1.442695, %v817_v52 }
 0x317   : > { %2727 = vpow2.f32 %v818_v53 }
 0x31a   : > { %v929_v54 = vpop.xlane.xlu0 %928 }
 0x31b   : > { %v930_v55 = vsub.f32 %v926_v34, %v929_v54 }
 0x31d   : > { %v931_v56 = vmul.f32 1.442695, %v930_v55 }
 0x31f   : > { %2729 = vpow2.f32 %v931_v56 }
 0x322   : > { %v1042_v57 = vpop.xlane.xlu0 %1041 }
 0x323   : > { %v1043_v58 = vsub.f32 %v1039_v40, %v1042_v57 }
 0x324   : > { %v2728_v59 = vpop.eup %2727 }
 0x325   : > { %v1044_v60 = vmul.f32 1.442695, %v1043_v58  ;;  %v820_v61 = vsel %vm766_vm2, %v2728_v59, 0.0 }
 0x326   : > { %821 = vadd.xlane.f32.xlu0 %v820_v61 }
 0x327   : > { %2731 = vpow2.f32 %v1044_v60 }
 0x32a   : > { %v1155_v3 = vpop.xlane.xlu1 %1154 }
 0x32b   : > { %v1156_v4 = vsub.f32 %v1152_v46, %v1155_v3  ;;  %v1237_v46 = vpack.c.bf16 %v1234_v45, %v1233_v44 }
 0x32c   : > { %v2730_v62 = vpop.eup %2729 }
 0x32d   : > { %v933_v63 = vsel %vm766_vm2, %v2730_v62, 0.0  ;;  %v1157_v5 = vmul.f32 1.442695, %v1156_v4  ;;  %2524 = vmatpush3.bf16.msra.mxu1 %v1237_v46 }
 0x32e   : > { %934 = vadd.xlane.f32.xlu1 %v933_v63  ;;  %2537 = vmatprep.subr.bf16.mxu1 %v3007_v0 }
 0x32f   : > { %2733 = vpow2.f32 %v1157_v5 }
 0x334   : > { %v2732_v1 = vpop.eup %2731 }
 0x335   : > { %v1046_v2 = vsel %vm766_vm2, %v2732_v1, 0.0 }
 0x336   : > { %1047 = vadd.xlane.f32.xlu0 %v1046_v2 }
 0x33c   : > { %v2734_v6 = vpop.eup %2733 }
 0x33d   : > { %v1159_v8 = vsel %vm766_vm2, %v2734_v6, 0.0 }
 0x33f   : > { %941 = vrot.lane.b32.xlu1 %v3303_v13, %s3016_s17  ;;  %s3737_s17 = smov 8  }
 0x34c   : > { %827 = vrot.lane.b32.xlu0 %v3303_v13, %s3017_s25  ;;  %s3741_s25 = smov 16  }
 0x350   : > { %1167 = vrot.lane.b32.xlu0 %v3303_v13, %s3018_s27  ;;  %s696_s27 = scalar_select %p695_p4, %s3148_s1, 1 }
 0x363   : > { %1160 = vadd.xlane.f32.xlu1 %v1159_v8  ;;  %v1317_v8 = vld [vmem:[#allocation5 + $0x10] sm:$0xff] }
 0x374   : > { %1054 = vrot.lane.b32.xlu1 %v3303_v13, %s3019_s22  ;;  %s2407_s22 = sshll.u32 %s696_s27, 4 }
 0x3af   : > { %v822_v9 = vpop.xlane.xlu0 %821 }
 0x3b0   : > { %2735 = vrcp.f32 %v822_v9  ;;  %v1318_v9 = vld [vmem:[#allocation5 + $0x18] sm:$0xff] }
 0x3b7   : > { %v935_v10 = vpop.xlane.xlu1 %934 }
 0x3b8   : > { %2737 = vrcp.f32 %v935_v10  ;;  %v1320_v10 = vpack.c.bf16 %v1318_v9, %v1317_v8 }
 0x3bb   : > { %v942_v17 = vpop.permute.xlu1 %941 }
 0x3bc   : > { %v947_v20 = vsel %vm832_vm3, %v942_v17, 0 }
 0x3bd   : > { %v2736_v11 = vpop.eup %2735 }
 0x3be   : > { %v824_v12 = vmul.f32 %v2736_v11, %v2728_v59  ;;  %v1315_v11 = vld [vmem:[#allocation5] sm:$0xff] }
 0x3bf   : > { %v1048_v14 = vpop.xlane.xlu0 %1047 }
 0x3c0   : > { %2739 = vrcp.f32 %v1048_v14  ;;  %825 = vst.msk [vmem:[%s3355_s0] sm:$0xff] %vm766_vm2, %v824_v12  ;;  %v826_v18 = vpack.c.bf16 %v824_v12, %v824_v12  ;;  %v1316_v12 = vld [vmem:[#allocation5 + $0x8] sm:$0xff] }
 0x3c1   : > { %v1319_v14 = vpack.c.bf16 %v1316_v12, %v1315_v11 }
 0x3c3   : > { %v828_v15 = vpop.permute.xlu0 %827 }
 0x3c4   : > { %v834_v13 = vsel %vm832_vm3, %v828_v15, 0 }
 0x3c5   : > { %v2738_v16 = vpop.eup %2737  ;;  %2480 = vmatpush3.bf16.msra.mxu0 %v834_v13 }
 0x3c6   : > { %2491 = vmatprep.subr.bf16.mxu0 %v3007_v0  ;;  %v937_v19 = vmul.f32 %v2738_v16, %v2730_v62  ;;  %v2375_v62 = vld [vmem:[%s3704_s5] ss:$0 sm:$0xff] }
 0x3c7   : > { %v1168_v27 = vpop.permute.xlu0 %1167 }
 0x3c8   : > { %2482 = vmatmul.mubr.msk.bf16.vlgmr.msra.gmra.mxu0 %vm766_vm2, %v826_v18  ;;  %2367 = vst.msk [vmem:[%s3355_s0 + $0x8] sm:$0xff] %vm766_vm2, %v937_v19  ;;  %v940_v22 = vpack.c.bf16 %v937_v19, %v937_v19  ;;  %v1173_v29 = vsel %vm832_vm3, %v1168_v27, 0  ;;  %v2377_v19 = vld [vmem:[%s3707_s8] ss:$0 sm:$0xff]  ;;  %v1305_v27 = vlaneseq }
 0x3c9   : > { %2492 = vmatpush3.bf16.msra.mxu0 %v947_v20  ;;  %2493 = vmatprep.mubr.msk.bf16.mxu0 %vm3008_vm0, %v3007_v0 }
 0x3ca   : > { %2503 = vmatprep.subr.bf16.mxu0 %v3007_v0 }
 0x3cd   : > { %v2740_v21 = vpop.eup %2739 }
 0x3ce   : > { %v1050_v23 = vmul.f32 %v2740_v21, %v2732_v1 }
 0x3d0   : > { %2494 = vmatmul.mubr.msk.bf16.vlgmr.msra.gmra.mxu0 %vm766_vm2, %v940_v22  ;;  %2370 = vst.msk [vmem:[%s3355_s0 + $0x10] sm:$0xff] %vm766_vm2, %v1050_v23  ;;  %v1053_v28 = vpack.c.bf16 %v1050_v23, %v1050_v23 }
 0x3d1   : > { %2505 = vmatprep.mubr.msk.bf16.mxu0 %vm3008_vm0, %v3007_v0 }
 0x3ec   : > { %v1161_v24 = vpop.xlane.xlu1 %1160 }
 0x3ed   : > { %2741 = vrcp.f32 %v1161_v24 }
 0x3f0   : > { %v1055_v25 = vpop.permute.xlu1 %1054 }
 0x3f1   : > { %v1060_v26 = vsel %vm832_vm3, %v1055_v25, 0 }
 0x3f2   : > { %2504 = vmatpush3.bf16.msra.mxu0 %v1060_v26 }
 0x3f3   : > { %2515 = vmatprep.subr.bf16.mxu0 %v3007_v0 }
 0x3f5   : > { %2506 = vmatmul.mubr.msk.bf16.vlgmr.msra.gmra.mxu0 %vm766_vm2, %v1053_v28  ;;  %v1306_v28 = vshrl.u32 %v1305_v27, 7 }
 0x3f6   : > { %2516 = vmatpush3.bf16.msra.mxu0 %v1173_v29  ;;  %2517 = vmatprep.mubr.msk.bf16.mxu0 %vm3008_vm0, %v3007_v0 }
 0x3f7   : > { %2529 = vmatprep.subr.bf16.mxu0 %v3007_v0  ;;  %v3432_v29 = vsub.s32 0, %v1306_v28 }
 0x3fa   : > { %v2742_v30 = vpop.eup %2741 }
 0x3fb   : > { %v1163_v31 = vmul.f32 %v2742_v30, %v2734_v6  ;;  %v1289_v30 = vld [vmem:[%s3705_s6] sm:$0x3] }
 0x3fd   : > { %2373 = vst.msk [vmem:[%s3355_s0 + $0x18] sm:$0xff] %vm766_vm2, %v1163_v31  ;;  %v1166_v32 = vpack.c.bf16 %v1163_v31, %v1163_v31  ;;  %v3437_v31 = vsub.s32 1, %v1306_v28 }
 0x3ff   : > { %2518 = vmatmul.mubr.msk.bf16.vlgmr.msra.gmra.mxu0 %vm766_vm2, %v1166_v32  ;;  %v1308_v32 = vrot.slane %v1289_v30, %v3432_v29 }
 0x400   : > { %2533 = vmatprep.mubr.msk.bf16.mxu0 %vm3008_vm0, %v3007_v0  ;;  %2530 = vmatpush3.bf16.msra.mxu0 %v1320_v10 }
 0x401   : > { %2531 = vmatprep.subr.bf16.mxu0 %v3007_v0 }
 0x404   : > { %2532 = vmatpush3.bf16.msra.mxu0 %v1319_v14 }
 0x405   : > { %2545 = vmatprep.subr.bf16.mxu0 %v3007_v0 }
 0x488   : > { %v870_v33 = vpop.f32.mrf.mxu0 }
 0x48a   : > { %v2483_v34 = vpop.f32.mrf.mxu0 }
 0x48c   : > { %v873_v35 = vpop.f32.mrf.mxu0 }
 0x48d   : > { %v1313_v35 = vrot.slane %v1289_v30, %v3437_v31 }
 0x48e   : > { %v2484_v36 = vpop.f32.mrf.mxu0 }
 0x490   : > { %v983_v37 = vpop.f32.mrf.mxu0 }
 0x491   : > { %1216 = vrot.lane.b32.xlu1 %v983_v37, %s3737_s17  ;;  %s3784_s17 = smov 24  }
 0x492   : > { %v2495_v38 = vpop.f32.mrf.mxu0 }
 0x494   : > { %v986_v39 = vpop.f32.mrf.mxu0 }
 0x496   : > { %v2496_v40 = vpop.f32.mrf.mxu0 }
 0x4b5   : > { %v1096_v47 = vpop.f32.mrf.mxu0 }
 0x4b6   : > { %1220 = vrot.lane.b32.xlu0 %v1096_v47, %s3741_s25 }
 0x4b7   : > { %v2507_v48 = vpop.f32.mrf.mxu0 }
 0x4b9   : > { %v1099_v49 = vpop.f32.mrf.mxu0 }
 0x4bb   : > { %v2508_v50 = vpop.f32.mrf.mxu0 }
 0x4bf   : > { %v1209_v51 = vpop.f32.mrf.mxu0 }
 0x4c0   : > { %1224 = vrot.lane.b32.xlu1 %v1209_v51, %s3740_s29  ;;  %s3778_s29 = sld [smem:[#allocation26_spill]] }
 0x4c1   : > { %v2519_v52 = vpop.f32.mrf.mxu0 }
 0x4c3   : > { %v1212_v53 = vpop.f32.mrf.mxu0 }
 0x4c5   : > { %v2520_v54 = vpop.f32.mrf.mxu0 }
 0x4c6   : > { %s699_s25 = scalar_lea.vmem %s3778_s29, %s2407_s22 }
 0x4c7   : > { %v702_v22 = vld [vmem:[%s699_s25] sm:$0xff]  ;;  %v703_v23 = vld [vmem:[%s699_s25 + $0x8] sm:$0xff]  ;;  %s3783_s25 = smov 16  }
 0x4c8   : > { %v1372_v26 = vpack.c.bf16 %v703_v23, %v702_v22 }
 0x503   : > { %v1217_v55 = vpop.permute.xlu1 %1216 }
 0x504   : > { %v1227_v57 = vsel %vm766_vm2, %v870_v33, %v1217_v55 }
 0x528   : > { %v1221_v56 = vpop.permute.xlu0 %1220 }
 0x529   : > { %v1229_v58 = vsel %vm1228_vm4, %v1227_v57, %v1221_v56 }
 0x532   : > { %v1225_v59 = vpop.permute.xlu1 %1224 }
 0x533   : > { %v1231_v60 = vsel %vm1230_vm5, %v1229_v58, %v1225_v59 }
 0x534   : > { %v1232_v61 = vpack.c.bf16 %v1231_v60, %v1231_v60 }
 0x536   : > { %2526 = vmatmul.mubr.msk.bf16.vlgmr.msra.gmra.mxu1 %vm718_vm1, %v1232_v61 }
 0x537   : > { %2541 = vmatprep.mubr.msk.bf16.mxu1 %vm3008_vm0, %v3007_v0 }
 0x5f6   : > { %v1283_v63 = vpop.f32.mrf.mxu1 }
 0x5f7   : > { %v1284_v1 = vadd.f32 %v2375_v62, %v1283_v63 }
 0x5f8   : > { %v2527_v2 = vpop.f32.mrf.mxu1 }
 0x5f9   : > { %v1290_v3 = vadd.f32 %v1284_v1, %v3291_v7 }
 0x5fa   : > { %v1286_v4 = vpop.f32.mrf.mxu1 }
 0x5fb   : > { %v1291_v5 = vsel %vm718_vm1, %v1290_v3, 0.0 }
 0x5fc   : > { %1292 = vadd.xlane.f32.xlu0 %v1291_v5  ;;  %v2528_v6 = vpop.f32.mrf.mxu1 }
 0x612   : > { %1377 = vrot.lane.b32.xlu0 %v1320_v10, %s3010_s21 }
 0x616   : > { %1381 = vrot.lane.b32.xlu0 %v2377_v19, %s3010_s21 }
 0x685   : > { %v1293_v7 = vpop.xlane.xlu0 %1292 }
 0x686   : > { %v1295_v15 = vmul.f32 0.03125, %v1293_v7 }
 0x688   : > { %v1296_v13 = vsub.f32 %v1290_v3, %v1295_v15 }
 0x689   : > { %v1378_v18 = vpop.permute.xlu0 %1377 }
 0x68a   : > { %v1297_v16 = vmul.f32 %v1296_v13, %v1296_v13  ;;  %2538 = vmatpush3.bf16.msra.mxu1 %v1378_v18 }
 0x68b   : > { %2539 = vmatprep.subr.bf16.mxu1 %v3007_v0 }
 0x68c   : > { %v1298_v17 = vsel %vm718_vm1, %v1297_v16, 0.0 }
 0x68d   : > { %1299 = vadd.xlane.f32.xlu1 %v1298_v17  ;;  %v1382_v40 = vpop.permute.xlu0 %1381 }
 0x69e   : > { %1375 = vrot.lane.b32.xlu1 %v1319_v14, %s3010_s21 }
 0x716   : > { %v1300_v20 = vpop.xlane.xlu1 %1299 }
 0x717   : > { %v1301_v21 = vmul.f32 0.03125, %v1300_v20 }
 0x719   : > { %v1302_v24 = vadd.f32 1e-05, %v1301_v21 }
 0x71a   : > { %v1376_v25 = vpop.permute.xlu1 %1375 }
 0x71b   : > { %2743 = vrsqrt.f32 %v1302_v24  ;;  %2540 = vmatpush3.bf16.msra.mxu1 %v1376_v25 }
 0x71c   : > { %2551 = vmatprep.subr.bf16.mxu1 %v3007_v0 }
 0x71e   : > { %2542 = vmatmul.mubr.msk.bf16.vlgmr.msra.gmra.mxu1 %vm718_vm1, %v1372_v26 }
 0x71f   : > { %2553 = vmatprep.mubr.msk.bf16.mxu1 %vm3008_vm0, %v3007_v0 }
 0x728   : > { %v2744_v33 = vpop.eup %2743 }
 0x729   : > { %v1304_v34 = vmul.f32 %v2744_v33, %v1296_v13 }
 0x72b   : > { %v1309_v36 = vmul.f32 %v1308_v32, %v1304_v34 }
 0x72d   : > { %v3441_v37 = vadd.f32 %v1313_v35, %v1309_v36 }
 0x72f   : > { %v1322_v38 = vpack.c.bf16 %v3441_v37, %v3441_v37 }
 0x731   : > { %2534 = vmatmul.mubr.msk.bf16.vlgmr.msra.gmra.mxu0 %vm718_vm1, %v1322_v38 }
 0x732   : > { %2547 = vmatprep.mubr.msk.bf16.mxu0 %vm3008_vm0, %v3007_v0 }
 0x7de   : > { %v1421_v39 = vpop.f32.mrf.mxu1 }
 0x7df   : > { %v1422_v42 = vadd.f32 %v1421_v39, %v1382_v40 }
 0x7e0   : > { %v2543_v41 = vpop.f32.mrf.mxu1 }
 0x7e2   : > { %v1424_v43 = vpop.f32.mrf.mxu1 }
 0x7e3   : > { %v1425_v44 = vadd.f32 %v1424_v43, %v1382_v40 }
 0x7e4   : > { %v2544_v45 = vpop.f32.mrf.mxu1 }
 0x7e5   : > { %v3448_v46 = vpack.c.bf16 %v1425_v44, %v1422_v42 }
 0x7e7   : > { %1540 = vrot.lane.b32.xlu1 %v3448_v46, %s3009_s16  ;;  %v1434_v47 = vsel %vm766_vm2, %v3448_v46, 0 }
 0x7e8   : > { %2546 = vmatpush3.bf16.xpose.msra.mxu0 %v1434_v47 }
 0x7e9   : > { %2557 = vmatprep.subr.bf16.mxu0 %v3007_v0 }
 0x7eb   : > { %1651 = vrot.lane.b32.xlu1 %v3448_v46, %s3014_s24 }
 0x7ef   : > { %1762 = vrot.lane.b32.xlu1 %v3448_v46, %s3015_s26 }
 0x7f1   : > { %v1366_v48 = vpop.f32.mrf.mxu0 }
 0x7f2   : > { %v1367_v49 = vadd.f32 %v2377_v19, %v1366_v48 }
 0x7f3   : > { %v2535_v50 = vpop.f32.mrf.mxu0 }
 0x7f4   : > { %v1428_v51 = vpack.c.bf16 %v1367_v49, %v1367_v49 }
 0x7f5   : > { %v1369_v52 = vpop.f32.mrf.mxu0 }
 0x7f6   : > { %1538 = vrot.lane.b32.xlu0 %v1428_v51, %s3009_s16  ;;  %2548 = vmatmul.mubr.msk.bf16.vlgmr.msra.gmra.mxu0 %vm766_vm2, %v1428_v51  ;;  %s3779_s16 = smov 72  }
 0x7f7   : > { %v2536_v53 = vpop.f32.mrf.mxu0  ;;  %2559 = vmatprep.mubr.msk.bf16.mxu0 %vm3008_vm0, %v3007_v0 }
 0x7fa   : > { %1649 = vrot.lane.b32.xlu0 %v1428_v51, %s3014_s24  ;;  %s3780_s24 = sshll.u32 %s3255_s20, 5 }
 0x7fe   : > { %1760 = vrot.lane.b32.xlu0 %v1428_v51, %s3015_s26  ;;  %s3495_s26 = scalar_lea.vmem [#allocation13], %s3780_s24  ;;  %s2153_s24 = sshll.u32 %s3355_s0, 4  ;;  %s3597_s24 = int_to_ptr.vmem [resolvable:$true] %s2153_s24 }
 0x859   : > { %v1541_v54 = vpop.permute.xlu1 %1540 }
 0x85a   : > { %v1546_v55 = vsel %vm766_vm2, %v1541_v54, 0 }
 0x85b   : > { %2558 = vmatpush3.bf16.xpose.msra.mxu0 %v1546_v55 }
 0x85c   : > { %2569 = vmatprep.subr.bf16.mxu0 %v3007_v0 }
 0x85d   : > { %v1652_v56 = vpop.permute.xlu1 %1651 }
 0x85e   : > { %v1657_v58 = vsel %vm766_vm2, %v1652_v56, 0 }
 0x861   : > { %v1763_v59 = vpop.permute.xlu1 %1762 }
 0x862   : > { %v1768_v61 = vsel %vm766_vm2, %v1763_v59, 0 }
 0x868   : > { %v1539_v57 = vpop.permute.xlu0 %1538 }
 0x869   : > { %2560 = vmatmul.mubr.msk.bf16.vlgmr.msra.gmra.mxu0 %vm766_vm2, %v1539_v57 }
 0x86a   : > { %2570 = vmatpush3.bf16.xpose.msra.mxu0 %v1657_v58  ;;  %2571 = vmatprep.mubr.msk.bf16.mxu0 %vm3008_vm0, %v3007_v0 }
 0x86b   : > { %2581 = vmatprep.subr.bf16.mxu0 %v3007_v0 }
 0x86c   : > { %v1650_v60 = vpop.permute.xlu0 %1649 }
 0x870   : > { %v1761_v62 = vpop.permute.xlu0 %1760 }
 0x871   : > { %2572 = vmatmul.mubr.msk.bf16.vlgmr.msra.gmra.mxu0 %vm766_vm2, %v1650_v60 }
 0x872   : > { %2582 = vmatpush3.bf16.xpose.msra.mxu0 %v1768_v61  ;;  %2583 = vmatprep.mubr.msk.bf16.mxu0 %vm3008_vm0, %v3007_v0 }
 0x873   : > { %2593 = vmatprep.subr.bf16.mxu0 %v3007_v0 }
 0x879   : > { %2584 = vmatmul.mubr.msk.bf16.vlgmr.msra.gmra.mxu0 %vm766_vm2, %v1761_v62 }
 0x87a   : > { %2597 = vmatprep.mubr.msk.bf16.mxu0 %vm3008_vm0, %v3007_v0 }
 0x8b6   : > { %v1470_v63 = vpop.f32.mrf.mxu0 }
 0x8b7   : > { %v1476_v1 = vmul.f32 0.70710677, %v1470_v63 }
 0x8b8   : > { %v2549_v2 = vpop.f32.mrf.mxu0 }
 0x8b9   : > { %v1477_v3 = vsel %vm1228_vm4, %v1476_v1, -inf }
 0x8ba   : > { %1478 = vmax.xlane.f32.xlu1 %v1477_v3  ;;  %v1473_v4 = vpop.f32.mrf.mxu0 }
 0x8bc   : > { %v2550_v5 = vpop.f32.mrf.mxu0 }
 0x929   : > { %v1582_v6 = vpop.f32.mrf.mxu0 }
 0x92a   : > { %v1588_v8 = vmul.f32 0.70710677, %v1582_v6 }
 0x92b   : > { %v2561_v9 = vpop.f32.mrf.mxu0 }
 0x92c   : > { %v1589_v10 = vsel %vm1228_vm4, %v1588_v8, -inf }
 0x92d   : > { %1590 = vmax.xlane.f32.xlu0 %v1589_v10  ;;  %v1585_v11 = vpop.f32.mrf.mxu0 }
 0x92f   : > { %v2562_v12 = vpop.f32.mrf.mxu0 }
 0x931   : > { %v1693_v14 = vpop.f32.mrf.mxu0 }
 0x932   : > { %v1699_v7 = vmul.f32 0.70710677, %v1693_v14  ;;  %v1889_v14 = vld [vmem:[#allocation7 + $0x10] sm:$0xff] }
 0x933   : > { %v2573_v15 = vpop.f32.mrf.mxu0 }
 0x934   : > { %v1700_v13 = vsel %vm1228_vm4, %v1699_v7, -inf }
 0x935   : > { %1701 = vmax.xlane.f32.xlu0 %v1700_v13  ;;  %v1696_v16 = vpop.f32.mrf.mxu0  ;;  %v1887_v13 = vld [vmem:[#allocation7] sm:$0xff] }
 0x936   : > { %v1888_v16 = vld [vmem:[#allocation7 + $0x8] sm:$0xff] }
 0x937   : > { %v2574_v17 = vpop.f32.mrf.mxu0 }
 0x938   : > { %v1891_v17 = vpack.c.bf16 %v1888_v16, %v1887_v13 }
 0x939   : > { %v1804_v18 = vpop.f32.mrf.mxu0 }
 0x93a   : > { %v1810_v19 = vmul.f32 0.70710677, %v1804_v18 }
 0x93b   : > { %v2585_v20 = vpop.f32.mrf.mxu0 }
 0x93c   : > { %v1811_v21 = vsel %vm1228_vm4, %v1810_v19, -inf }
 0x93d   : > { %1812 = vmax.xlane.f32.xlu1 %v1811_v21  ;;  %v1807_v22 = vpop.f32.mrf.mxu0 }
 0x93f   : > { %v2586_v23 = vpop.f32.mrf.mxu0 }
 0x943   : > { %v1479_v24 = vpop.xlane.xlu1 %1478 }
 0x944   : > { %v1480_v25 = vsub.f32 %v1476_v1, %v1479_v24 }
 0x946   : > { %v1481_v26 = vmul.f32 1.442695, %v1480_v25 }
 0x948   : > { %2745 = vpow2.f32 %v1481_v26 }
 0x955   : > { %v2746_v27 = vpop.eup %2745 }
 0x956   : > { %v1483_v28 = vsel %vm1228_vm4, %v2746_v27, 0.0 }
 0x957   : > { %1484 = vadd.xlane.f32.xlu0 %v1483_v28 }
 0x9b6   : > { %v1591_v30 = vpop.xlane.xlu0 %1590 }
 0x9b7   : > { %v1592_v32 = vsub.f32 %v1588_v8, %v1591_v30 }
 0x9b9   : > { %v1593_v33 = vmul.f32 1.442695, %v1592_v32 }
 0x9bb   : > { %2747 = vpow2.f32 %v1593_v33 }
 0x9be   : > { %v1702_v34 = vpop.xlane.xlu0 %1701 }
 0x9bf   : > { %v1703_v35 = vsub.f32 %v1699_v7, %v1702_v34  ;;  %v1890_v7 = vld [vmem:[#allocation7 + $0x18] sm:$0xff] }
 0x9c0   : > { %v1892_v15 = vpack.c.bf16 %v1890_v7, %v1889_v14  ;;  %v2028_v14 = vld [vmem:[%s3713_s14 + $0x8] sm:$0xff] }
 0x9c1   : > { %v1704_v36 = vmul.f32 1.442695, %v1703_v35  ;;  %v2391_v35 = vld [vmem:[%s3709_s10] ss:$0 sm:$0xff] }
 0x9c2   : > { %2594 = vmatpush3.bf16.msra.mxu0 %v1892_v15  ;;  %v2393_v15 = vld [vmem:[%s3712_s13] ss:$0 sm:$0xff] }
 0x9c3   : > { %2749 = vpow2.f32 %v1704_v36  ;;  %2595 = vmatprep.subr.bf16.mxu0 %v3007_v0 }
 0x9c6   : > { %v1813_v43 = vpop.xlane.xlu1 %1812  ;;  %2596 = vmatpush3.bf16.msra.mxu0 %v1891_v17 }
 0x9c7   : > { %v1814_v44 = vsub.f32 %v1810_v19, %v1813_v43  ;;  %2609 = vmatprep.subr.bf16.mxu0 %v3007_v0 }
 0x9c8   : > { %v2748_v38 = vpop.eup %2747 }
 0x9c9   : > { %v1595_v39 = vsel %vm1228_vm4, %v2748_v38, 0.0  ;;  %v1815_v45 = vmul.f32 1.442695, %v1814_v44 }
 0x9ca   : > { %1596 = vadd.xlane.f32.xlu1 %v1595_v39 }
 0x9d0   : > { %v2750_v40 = vpop.eup %2749 }
 0x9d1   : > { %v1706_v41 = vsel %vm1228_vm4, %v2750_v40, 0.0 }
 0x9d2   : > { %1707 = vadd.xlane.f32.xlu0 %v1706_v41 }
 0x9db   : > { %1603 = vrot.lane.b32.xlu1 %v3448_v46, %s3012_s9  ;;  %s3781_s9 = smov 80  }
 0x9e0   : > { %v1485_v42 = vpop.xlane.xlu0 %1484 }
 0x9e1   : > { %2751 = vrcp.f32 %v1485_v42 }
 0x9e2   : > { %2753 = vpow2.f32 %v1815_v45 }
 0x9e8   : > { %1491 = vrot.lane.b32.xlu0 %v3448_v46, %s3010_s21  ;;  %s3782_s21 = smov 8  }
 0x9ec   : > { %1825 = vrot.lane.b32.xlu0 %v3448_v46, %s3779_s16  ;;  %s3594_s16 = scalar_lea.hbm %s3717_s18, %s3742_s2 }
 0x9ee   : > { %v2752_v47 = vpop.eup %2751 }
 0x9ef   : > { %v1487_v48 = vmul.f32 %v2752_v47, %v2746_v27  ;;  %v2754_v49 = vpop.eup %2753 }
 0x9f0   : > { %v1817_v50 = vsel %vm1228_vm4, %v2754_v49, 0.0 }
 0x9f1   : > { %1488 = vst.msk [vmem:[%s3495_s26] sm:$0xff] %vm1228_vm4, %v1487_v48  ;;  %v1489_v55 = vpack.c.bf16 %v1487_v48, %v1487_v48 }
 0x9ff   : > { %1818 = vadd.xlane.f32.xlu1 %v1817_v50  ;;  %v1971_v50 = vld [vmem:[#allocation8 + $0x10] sm:$0xff] }
 0xa10   : > { %1714 = vrot.lane.b32.xlu1 %v3448_v46, %s3781_s9  ;;  %s3599_s9 = scalar_lea.sflag [#allocation12], %s2121_s7 }
 0xa53   : > { %v1597_v51 = vpop.xlane.xlu1 %1596 }
 0xa54   : > { %2755 = vrcp.f32 %v1597_v51  ;;  %v1972_v51 = vld [vmem:[#allocation8 + $0x18] sm:$0xff] }
 0xa57   : > { %v1604_v57 = vpop.permute.xlu1 %1603 }
 0xa5b   : > { %v1708_v52 = vpop.xlane.xlu0 %1707 }
 0xa5c   : > { %2757 = vrcp.f32 %v1708_v52  ;;  %v1974_v52 = vpack.c.bf16 %v1972_v51, %v1971_v50 }
 0xa5f   : > { %v1492_v53 = vpop.permute.xlu0 %1491 }
 0xa60   : > { %2552 = vmatpush3.bf16.msra.mxu1 %v1492_v53  ;;  %v1969_v53 = vld [vmem:[#allocation8] sm:$0xff] }
 0xa61   : > { %v2756_v54 = vpop.eup %2755  ;;  %2563 = vmatprep.subr.bf16.mxu1 %v3007_v0 }
 0xa62   : > { %v1599_v56 = vmul.f32 %v2756_v54, %v2748_v38  ;;  %v1970_v54 = vld [vmem:[#allocation8 + $0x8] sm:$0xff] }
 0xa63   : > { %2554 = vmatmul.mubr.msk.bf16.vlgmr.msra.gmra.mxu1 %vm1228_vm4, %v1489_v55  ;;  %v1826_v63 = vpop.permute.xlu0 %1825  ;;  %v1973_v55 = vpack.c.bf16 %v1970_v54, %v1969_v53 }
 0xa64   : > { %2564 = vmatpush3.bf16.msra.mxu1 %v1604_v57  ;;  %2565 = vmatprep.mubr.msk.bf16.mxu1 %vm3008_vm0, %v3007_v0  ;;  %2383 = vst.msk [vmem:[%s3495_s26 + $0x8] sm:$0xff] %vm1228_vm4, %v1599_v56  ;;  %v1602_v58 = vpack.c.bf16 %v1599_v56, %v1599_v56  ;;  %v2034_v56 = vld [vmem:[%s3713_s14 + $0x38] sm:$0xff]  ;;  %v2031_v57 = vld [vmem:[%s3713_s14 + $0x20] sm:$0xff] }
 0xa65   : > { %2575 = vmatprep.subr.bf16.mxu1 %v3007_v0 }
 0xa69   : > { %v2758_v46 = vpop.eup %2757 }
 0xa6a   : > { %v1710_v59 = vmul.f32 %v2758_v46, %v2750_v40 }
 0xa6b   : > { %2566 = vmatmul.mubr.msk.bf16.vlgmr.msra.gmra.mxu1 %vm1228_vm4, %v1602_v58  ;;  %v2032_v58 = vld [vmem:[%s3713_s14 + $0x28] sm:$0xff] }
 0xa6c   : > { %2577 = vmatprep.mubr.msk.bf16.mxu1 %vm3008_vm0, %v3007_v0  ;;  %2386 = vst.msk [vmem:[%s3495_s26 + $0x10] sm:$0xff] %vm1228_vm4, %v1710_v59  ;;  %v1713_v62 = vpack.c.bf16 %v1710_v59, %v1710_v59  ;;  %v2037_v59 = vpack.c.bf16 %v2032_v58, %v2031_v57 }
 0xa88   : > { %v1819_v60 = vpop.xlane.xlu1 %1818 }
 0xa89   : > { %2759 = vrcp.f32 %v1819_v60 }
 0xa8c   : > { %v1715_v61 = vpop.permute.xlu1 %1714 }
 0xa8d   : > { %2576 = vmatpush3.bf16.msra.mxu1 %v1715_v61 }
 0xa8e   : > { %2587 = vmatprep.subr.bf16.mxu1 %v3007_v0 }
 0xa90   : > { %2578 = vmatmul.mubr.msk.bf16.vlgmr.msra.gmra.mxu1 %vm1228_vm4, %v1713_v62 }
 0xa91   : > { %2588 = vmatpush3.bf16.msra.mxu1 %v1826_v63  ;;  %2589 = vmatprep.mubr.msk.bf16.mxu1 %vm3008_vm0, %v3007_v0  ;;  %v1943_v63 = vld [vmem:[%s3710_s11] sm:$0x3] }
 0xa92   : > { %2601 = vmatprep.subr.bf16.mxu1 %v3007_v0 }
 0xa96   : > { %v2760_v1 = vpop.eup %2759 }
 0xa97   : > { %v1821_v2 = vmul.f32 %v2760_v1, %v2754_v49  ;;  %v1961_v1 = vrot.slane %v1943_v63, %v3432_v29 }
 0xa99   : > { %2389 = vst.msk [vmem:[%s3495_s26 + $0x18] sm:$0xff] %vm1228_vm4, %v1821_v2  ;;  %v1824_v3 = vpack.c.bf16 %v1821_v2, %v1821_v2 }
 0xa9b   : > { %2590 = vmatmul.mubr.msk.bf16.vlgmr.msra.gmra.mxu1 %vm1228_vm4, %v1824_v3 }
 0xa9c   : > { %2605 = vmatprep.mubr.msk.bf16.mxu1 %vm3008_vm0, %v3007_v0  ;;  %2602 = vmatpush3.bf16.msra.mxu1 %v1974_v52 }
 0xa9d   : > { %2603 = vmatprep.subr.bf16.mxu1 %v3007_v0 }
 0xaa0   : > { %2604 = vmatpush3.bf16.msra.mxu1 %v1973_v55 }
 0xb23   : > { %v1531_v4 = vpop.f32.mrf.mxu1 }
 0xb25   : > { %v2555_v5 = vpop.f32.mrf.mxu1 }
 0xb27   : > { %v1534_v6 = vpop.f32.mrf.mxu1 }
 0xb29   : > { %v2556_v8 = vpop.f32.mrf.mxu1 }
 0xb2b   : > { %v1643_v9 = vpop.f32.mrf.mxu1 }
 0xb2c   : > { %1872 = vrot.lane.b32.xlu1 %v1643_v9, %s3782_s21  ;;  %v2029_v9 = vld [vmem:[%s3713_s14 + $0x10] sm:$0xff] }
 0xb2d   : > { %v2567_v10 = vpop.f32.mrf.mxu1 }
 0xb2e   : > { %v2030_v10 = vld [vmem:[%s3713_s14 + $0x18] sm:$0xff] }
 0xb2f   : > { %v1646_v11 = vpop.f32.mrf.mxu1 }
 0xb30   : > { %v2036_v11 = vpack.c.bf16 %v2030_v10, %v2029_v9 }
 0xb31   : > { %v2568_v12 = vpop.f32.mrf.mxu1 }
 0xb32   : > { %v2027_v12 = vld [vmem:[%s3713_s14] sm:$0xff] }
 0xb33   : > { %v2035_v7 = vpack.c.bf16 %v2028_v14, %v2027_v12 }
 0xb50   : > { %v1754_v18 = vpop.f32.mrf.mxu1 }
 0xb51   : > { %1876 = vrot.lane.b32.xlu0 %v1754_v18, %s3783_s25  ;;  %s2871_s25 = scalar_lea.vmem %s3597_s24, 512 }
 0xb52   : > { %v2579_v19 = vpop.f32.mrf.mxu1  ;;  %p2872_p6 = scmp.ne.s32.totalorder %s3597_s24, %s2871_s25 }
 0xb54   : > { %v1757_v20 = vpop.f32.mrf.mxu1  ;;  %p2873_p0 = pnand %p2872_p6, %p3785_p12 }
 0xb56   : > { %v2580_v21 = vpop.f32.mrf.mxu1  ;;  %p2874_p5 = pneg %p2873_p0 }
 0xb57   : > { %v2395_v21 = vld [vmem:[%s3714_s15] ss:$0 sm:$0xff] }
 0xb5b   : > { %v1865_v22 = vpop.f32.mrf.mxu1 }
 0xb5c   : > { %1880 = vrot.lane.b32.xlu1 %v1865_v22, %s3784_s17  ;;  %s3023_s17 = smov [#allocation11]  }
 0xb5d   : > { %v2591_v23 = vpop.f32.mrf.mxu1  ;;  %s2875_s27 = sshll.u32 %s3023_s17, 4  ;;  %s2876_s27 = int_to_ptr.vmem [resolvable:$false] %s2875_s27 }
 0xb5e   : > { %s2877_s22 = scalar_lea.vmem %s2876_s27, 1024  ;;  %p2878_p3 = scmp.lt.s32.totalorder %s3597_s24, %s2876_s27 }
 0xb5f   : > { %v1868_v24 = vpop.f32.mrf.mxu1  ;;  %p2879_p7 = scmp.lt.s32.totalorder %s2877_s22, %s2871_s25 }
 0xb61   : > { %v2592_v25 = vpop.f32.mrf.mxu1  ;;  %p2880_p9 = por %p2879_p7, %p2878_p3 }
 0xb63   : > { %p2881_p13 = pnand %p2880_p9, %p2874_p5 }
 0xb9e   : > { %v1873_v26 = vpop.permute.xlu1 %1872 }
 0xb9f   : > { %v1883_v28 = vsel %vm766_vm2, %v1531_v4, %v1873_v26  ;;  %v1966_v4 = vrot.slane %v1943_v63, %v3437_v31 }
 0xbc3   : > { %v1877_v27 = vpop.permute.xlu0 %1876 }
 0xbc4   : > { %v1884_v30 = vsel %vm1228_vm4, %v1883_v28, %v1877_v27 }
 0xbce   : > { %v1881_v32 = vpop.permute.xlu1 %1880 }
 0xbcf   : > { %v1885_v33 = vsel %vm1230_vm5, %v1884_v30, %v1881_v32 }
 0xbd0   : > { %v1886_v34 = vpack.c.bf16 %v1885_v33, %v1885_v33 }
 0xbd2   : > { %2598 = vmatmul.mubr.msk.bf16.vlgmr.msra.gmra.mxu0 %vm718_vm1, %v1886_v34 }
 0xbd3   : > { %2617 = vmatprep.mubr.msk.bf16.mxu0 %vm3008_vm0, %v3007_v0 }
 0xc92   : > { %v1937_v36 = vpop.f32.mrf.mxu0 }
 0xc93   : > { %v1938_v38 = vadd.f32 %v2391_v35, %v1937_v36 }
 0xc94   : > { %v2599_v39 = vpop.f32.mrf.mxu0 }
 0xc95   : > { %v1944_v40 = vadd.f32 %v1938_v38, %v3441_v37  ;;  %v2033_v37 = vld [vmem:[%s3713_s14 + $0x30] sm:$0xff] }
 0xc96   : > { %v1940_v41 = vpop.f32.mrf.mxu0  ;;  %v2038_v46 = vpack.c.bf16 %v2034_v56, %v2033_v37 }
 0xc97   : > { %v1945_v42 = vsel %vm718_vm1, %v1944_v40, 0.0 }
 0xc98   : > { %1946 = vadd.xlane.f32.xlu0 %v1945_v42  ;;  %v2600_v43 = vpop.f32.mrf.mxu0  ;;  %2610 = vmatpush3.bf16.msra.mxu0 %v2038_v46 }
 0xc99   : > { %2611 = vmatprep.subr.bf16.mxu0 %v3007_v0 }
 0xc9c   : > { %2612 = vmatpush3.bf16.msra.mxu0 %v2037_v59 }
 0xc9d   : > { %2613 = vmatprep.subr.bf16.mxu0 %v3007_v0 }
 0xca0   : > { %2614 = vmatpush3.bf16.msra.mxu0 %v2036_v11 }
 0xca1   : > { %2615 = vmatprep.subr.bf16.mxu0 %v3007_v0 }
 0xca4   : > { %2616 = vmatpush3.bf16.msra.mxu0 %v2035_v7 }
 0xd21   : > { %v1947_v44 = vpop.xlane.xlu0 %1946 }
 0xd22   : > { %v1948_v45 = vmul.f32 0.03125, %v1947_v44 }
 0xd24   : > { %v1949_v47 = vsub.f32 %v1944_v40, %v1948_v45 }
 0xd26   : > { %v1950_v48 = vmul.f32 %v1949_v47, %v1949_v47 }
 0xd28   : > { %v1951_v49 = vsel %vm718_vm1, %v1950_v48, 0.0 }
 0xd29   : > { %1952 = vadd.xlane.f32.xlu1 %v1951_v49 }
 0xdb2   : > { %v1953_v60 = vpop.xlane.xlu1 %1952 }
 0xdb3   : > { %v1954_v61 = vmul.f32 0.03125, %v1953_v60 }
 0xdb5   : > { %v1955_v62 = vadd.f32 1e-05, %v1954_v61 }
 0xdb7   : > { %2761 = vrsqrt.f32 %v1955_v62 }
 0xdc4   : > { %v2762_v2 = vpop.eup %2761 }
 0xdc5   : > { %v1957_v3 = vmul.f32 %v2762_v2, %v1949_v47 }
 0xdc7   : > { %v1962_v5 = vmul.f32 %v1961_v1, %v1957_v3 }
 0xdc9   : > { %v1967_v6 = vadd.f32 %v1966_v4, %v1962_v5 }
 0xdcb   : > { %v1968_v8 = vpack.c.bf16 %v1967_v6, %v1967_v6 }
 0xdcd   : > { %2606 = vmatmul.mubr.msk.bf16.vlgmr.msra.gmra.mxu1 %vm718_vm1, %v1968_v8 }
 0xe8d   : > { %v2019_v13 = vpop.f32.mrf.mxu1 }
 0xe8e   : > { %v2020_v16 = vadd.f32 %v2393_v15, %v2019_v13 }
 0xe8f   : > { %v2607_v17 = vpop.f32.mrf.mxu1 }
 0xe90   : > { %v2025_v18 = vmax.f32 %v2020_v16, 0.0 }
 0xe91   : > { %v2022_v19 = vpop.f32.mrf.mxu1 }
 0xe92   : > { %v2026_v0 = vpack.c.bf16 %v2025_v18, %v2025_v18 }
 0xe93   : > { %v2608_v20 = vpop.f32.mrf.mxu1 }
 0xe94   : > { %2618 = vmatmul.mubr.msk.bf16.vlgmr.msra.gmra.mxu0 %vm2046_vm6, %v2026_v0 }
 0xf54   : > { %v2084_v22 = vpop.f32.mrf.mxu0 }
 0xf55   : > { %v2085_v23 = vadd.f32 %v2395_v21, %v2084_v22 }
 0xf56   : > { %v2619_v24 = vpop.f32.mrf.mxu0 }
 0xf57   : > { %v2091_v25 = vadd.f32 %v2085_v23, %v1967_v6 }
 0xf58   : > { %v2087_v26 = vpop.f32.mrf.mxu0 }
 0xf59   : > { %v2092_v27 = vsel %vm718_vm1, %v2091_v25, 0.0 }
 0xf5a   : > { %2093 = vadd.xlane.f32.xlu0 %v2092_v27  ;;  %v2620_v28 = vpop.f32.mrf.mxu0 }
 0xfe3   : > { %v2094_v30 = vpop.xlane.xlu0 %2093 }
 0xfe4   : > { %v2095_v32 = vmul.f32 0.03125, %v2094_v30 }
 0xfe6   : > { %v3582_v33 = vsub.f32 %v2091_v25, %v2095_v32 }
 0xfe8   : > { %v2097_v34 = vmul.f32 %v3582_v33, %v3582_v33 }
 0xfea   : > { %v2098_v35 = vsel %vm718_vm1, %v2097_v34, 0.0 }
 0xfeb   : > { %2099 = vadd.xlane.f32.xlu0 %v2098_v35 }
 0xfec   : > { %2884 = shalt.err (!%p2881_p13)
}
 0xfed   : > { %s2885_s0 = scalar_lea.hbm %s3594_s16, 512  ;;  %s2889_s28 = scalar_lea.hbm %s3717_s18, 1024 }
 0xfee   : > { %p2886_p10 = scmp.ne.s32.totalorder %s3594_s16, %s2885_s0  ;;  %p2890_p1 = scmp.lt.s32.totalorder %s3594_s16, %s3717_s18 }
 0xfef   : > { %p2891_p2 = scmp.lt.s32.totalorder %s2889_s28, %s2885_s0 }
 0xff0   : > { %p2887_p8 = pnand %p2886_p10, %p3785_p12 }
 0xff1   : > { %p2892_p4 = por %p2891_p2, %p2890_p1 }
 0xff2   : > { %p2888_p11 = pneg %p2887_p8 }
 0xff4   : > { %p2893_p6 = pnand %p2892_p4, %p2888_p11 }
 0xff6   : > { %2896 = shalt.err (!%p2893_p6)
}
 0xff7   : > { %s3024_s25 = smov 128   ;;  %s3786_s27 = sshll.u32 %s3148_s1, 9 }
 0xff8   : > { %2636 = dma.vmem_to_hbm [thread:$0]  (%p3785_p12), %s3597_s24, 512, %s3594_s16, %s3599_s9, %s3024_s25, %s3024_s25, %s3782_s21  }
 0xff9   : > { %s3630_s0 = scalar_lea.hbm %s3718_s19, %s3786_s27  ;;  %s2169_s7 = sshll.u32 %s3495_s26, 4  ;;  %s2170_s7 = int_to_ptr.vmem [resolvable:$true] %s2169_s7 }
 0xffa   : > { %s2897_s29 = scalar_lea.vmem %s2170_s7, 512  ;;  %s3025_s28 = smov [#allocation13]  }
 0xffb   : > { %p2898_p0 = scmp.ne.s32.totalorder %s2170_s7, %s2897_s29  ;;  %s2901_s17 = sshll.u32 %s3025_s28, 4  ;;  %s2902_s17 = int_to_ptr.vmem [resolvable:$false] %s2901_s17 }
 0xffc   : > { %s2903_s3 = scalar_lea.vmem %s2902_s17, 1024  ;;  %p2904_p7 = scmp.lt.s32.totalorder %s2170_s7, %s2902_s17 }
 0xffd   : > { %p2899_p5 = pnand %p2898_p0, %p3785_p12  ;;  %p2905_p9 = scmp.lt.s32.totalorder %s2903_s3, %s2897_s29 }
 0xfff   : > { %p2900_p3 = pneg %p2899_p5  ;;  %p2906_p13 = por %p2905_p9, %p2904_p7 }
0x1001   : > { %p2907_p10 = pnand %p2906_p13, %p2900_p3 }
0x1003   : > { %2910 = shalt.err (!%p2907_p10)
}
0x1004   : > { %s2911_s26 = scalar_lea.hbm %s3630_s0, 512  ;;  %s2915_s27 = scalar_lea.hbm %s3718_s19, 1024 }
0x1005   : > { %p2912_p8 = scmp.ne.s32.totalorder %s3630_s0, %s2911_s26  ;;  %p2916_p2 = scmp.lt.s32.totalorder %s3630_s0, %s3718_s19 }
0x1006   : > { %p2917_p4 = scmp.lt.s32.totalorder %s2915_s27, %s2911_s26 }
0x1007   : > { %p2913_p11 = pnand %p2912_p8, %p3785_p12 }
0x1008   : > { %p2918_p6 = por %p2917_p4, %p2916_p2 }
0x1009   : > { %p2914_p1 = pneg %p2913_p11 }
0x100b   : > { %p2919_p0 = pnand %p2918_p6, %p2914_p1 }
0x100d   : > { %2922 = shalt.err (!%p2919_p0)
}
0x100e   : > { %2637 = dma.vmem_to_hbm [thread:$0]  (%p3785_p12), %s2170_s7, 512, %s3630_s0, %s3599_s9, %s3024_s25, %s3024_s25, %s3782_s21  }
0x100f   : > { %s3787_s28 = sld [smem:[#allocation32_spill]]  ;;  %s2400_s17 = sshll.u32 %s3148_s1, 7 }
0x1010   : > { %s3788_s26 = sshll.u32 %s3255_s20, 3  ;;  %s3789_s7 = sld [smem:[#allocation33_spill]] }
0x1011   : > { %s680_s21 = scalar_lea.vmem [#allocation10], %s3788_s26  ;;  %s2117_s24 = scalar_lea.sflag [#allocation4], %s3255_s20 }
0x1012   : > { %s2140_s9 = sshll.u32 %s680_s21, 4  ;;  %s3026_s2 = smov [#allocation10]   ;;  %s2141_s9 = int_to_ptr.vmem [resolvable:$true] %s2140_s9 }
0x1013   : > { %s2923_s27 = scalar_lea.vmem %s2141_s9, 128  ;;  %s2927_s1 = sshll.u32 %s3026_s2, 4  ;;  %s2928_s1 = int_to_ptr.vmem [resolvable:$false] %s2927_s1 }
0x1014   : > { %p2924_p5 = scmp.ne.s32.totalorder %s2141_s9, %s2923_s27  ;;  %s2929_s22 = scalar_lea.vmem %s2928_s1, 256 }
0x1015   : > { %v2090_v40 = vld [vmem:[%s3787_s28] sm:$0x3]  ;;  %p2930_p9 = scmp.lt.s32.totalorder %s2141_s9, %s2928_s1  ;;  %p2931_p13 = scmp.lt.s32.totalorder %s2929_s22, %s2923_s27 }
0x1016   : > { %v2108_v41 = vrot.slane %v2090_v40, %v3432_v29  ;;  %v2113_v44 = vrot.slane %v2090_v40, %v3437_v31  ;;  %s2138_s16 = scalar_lea.hbm %s3789_s7, %s2400_s17  ;;  %p2925_p3 = pnand %p2924_p5, %p3785_p12 }
0x1017   : > { %p2932_p10 = por %p2931_p13, %p2930_p9 }
0x1018   : > { %p2926_p7 = pneg %p2925_p3 }
0x101a   : > { %p2933_p8 = pnand %p2932_p10, %p2926_p7 }
0x1074   : > { %v2100_v36 = vpop.xlane.xlu0 %2099 }
0x1075   : > { %v2101_v38 = vmul.f32 0.03125, %v2100_v36 }
0x1077   : > { %v2102_v39 = vadd.f32 1e-05, %v2101_v38 }
0x1079   : > { %2763 = vrsqrt.f32 %v2102_v39 }
0x1086   : > { %v2764_v42 = vpop.eup %2763 }
0x1087   : > { %v2104_v43 = vmul.f32 %v2764_v42, %v3582_v33 }
0x1089   : > { %v2109_v45 = vmul.f32 %v2108_v41, %v2104_v43 }
0x108b   : > { %v2114_v47 = vadd.f32 %v2113_v44, %v2109_v45 }
0x108d   : > { %2115 = vst.msk [vmem:[%s680_s21] sm:$0xff] %vm718_vm1, %v2114_v47 }
0x108e   : > { %2936 = shalt.err (!%p2933_p8)
}
0x108f   : > { %s2937_s3 = scalar_lea.hbm %s2138_s16, 128  ;;  %s2941_s28 = scalar_lea.hbm %s3789_s7, 256 }
0x1090   : > { %p2938_p11 = scmp.ne.s32.totalorder %s2138_s16, %s2937_s3  ;;  %p2942_p4 = scmp.lt.s32.totalorder %s2138_s16, %s3789_s7 }
0x1091   : > { %p2943_p6 = scmp.lt.s32.totalorder %s2941_s28, %s2937_s3 }
0x1092   : > { %p2939_p1 = pnand %p2938_p11, %p3785_p12 }
0x1093   : > { %p2944_p0 = por %p2943_p6, %p2942_p4 }
0x1094   : > { %p2940_p2 = pneg %p2939_p1 }
0x1096   : > { %p2945_p5 = pnand %p2944_p0, %p2940_p2 }
0x1098   : > { %2948 = shalt.err (!%p2945_p5)
}
0x1099   : > { %2635 = dma.vmem_to_hbm [thread:$0]  (%p3785_p12), %s2141_s9, 128, %s2138_s16, %s2117_s24  }
0x109a PF: > { %s3790_s21 = sld [smem:[#allocation19_spill]] }
0x109b   : > { %s3791_s25 = sld [smem:[#allocation22_spill]] }
0x109c   : > { %s3792_s0 = sld [smem:[#allocation21_spill]] }
0x10a0   : > { %s2184_s27 = sand.u32 1, %s3790_s21  }
0x10a1   : > { %p3793_p3 = scmp.ne.s32.totalorder %s3791_s25, 0  ;;  %s2185_s2 = scalar_lea.sflag [#allocation4], %s2184_s27 }
0x10a2   : > { %p3794_p7 = scmp.ge.s32.totalorder %s3792_s0, 2 }
0x10a4   : > { %p2656_p9 = pnand %p3794_p7, %p3793_p3 }
0x10a6   : > { %p2657_p13 = pneg %p2656_p9 }
0x10a8   : > { %2978 = dma.done.wait (%p2657_p13), %s2185_s2, 128  }
0x10a9   : > { %2980 = vsyncadd (%p2657_p13), %s2185_s2, 4294967168  ;;  %s3795_s1 = sadd.s32 4294967294, %s3792_s0  }
0x10aa   : > { %s2193_s22 = sand.u32 1, %s3795_s1  }
0x10ab   : > { %s2194_s3 = scalar_lea.sflag [#allocation12], %s2193_s22 }
0x10ac   : > { %2982 = dma.done.wait (%p2657_p13), %s2194_s3, 1024  }
0x10ad   : > { %2984 = vsyncadd (%p2657_p13), %s2194_s3, 4294966272  ;;  %s3796_s21 = sld [smem:[#allocation23_spill]]  ;;  %s3799_s0 = smov %s2991_s30 }
0x10ae   : > { %s3797_s23 = sld [smem:[#allocation20_spill]] }
0x10af   : > { %s3798_s20 = sld [smem:[#allocation24_spill]] }
0x10b3   : > { %p38_p12 = scmp.ge.s32.totalorder %s3796_s21, 4  }
0x10b4   : > { %s3800_s30 = smov %s3797_s23 }
0x10b5   :  { %40 = sbr.rel (!%p38_p12) target bundleno = 19 (0x13), region = 186 }
0x10ba   :  { %2208 = vsyncpa [#allocation3], 1 }
0x10bb   :  { %2210 = vsyncpa [#allocation3 + $0x1], 1 }
0x10bc   :  { %2211 = vsyncpa [#allocation6], 1 }
0x10bd   :  { %2212 = vsyncpa [#allocation9], 1 }
0x10be   :  { %2213 = vsyncpa [#allocation4], 1 }
0x10bf   :  { %2215 = vsyncpa [#allocation4 + $0x1], 1 }
0x10c0   :  { %2216 = vsyncpa [#allocation12], 1 }
0x10c1   :  { %2218 = vsyncpa [#allocation12 + $0x1], 1 }

</bundles_post_ra>
